<compile_context>
chip_gen: v5e
topology: v5e:2x2
jax: 0.10.0
libtpu: 0.0.40
codegen_flags: <defaults>
</compile_context>

<pallas_src>
import functools

import jax
import jax.numpy as jnp
from jax.experimental import pallas as pl
from jax.experimental.pallas import tpu as pltpu


# ------------------------- activations (match torch) -------------------------

def _silu(x):
    return x * (1.0 / (1.0 + jnp.exp(-x)))


def _softplus(x):
    # torch.nn.Softplus(beta=1, threshold=20)
    sp = jnp.log1p(jnp.exp(-jnp.abs(x))) + jnp.maximum(x, 0.0)
    return jnp.where(x > 20.0, x, sp)


# ------------------------------ Pallas kernel --------------------------------

def cgcnn_kernel(conv_number, n_fc,
                 v0_ref, e_ref, src_ref, dstc_ref, dstr_ref, pool_ref,
                 w_emb_ref, b_emb_ref,
                 we_ref, be_ref, wn_ref, wec_ref, bc_ref, bns_ref, bnt_ref,
                 *rest):
    fc_refs = rest[:2 * n_fc]
    wp_ref = rest[2 * n_fc]
    bp_ref = rest[2 * n_fc + 1]
    out_ref = rest[2 * n_fc + 2]

    N = v0_ref.shape[0]
    E = e_ref.shape[0]
    H = w_emb_ref.shape[1]

    def dot(a, b):
        # MXU matmul at default precision (forced HIGHEST dropped per review).
        return jnp.dot(a, b, preferred_element_type=jnp.float32)

    # ---- loop-invariant gather/scatter one-hot masks, built ONCE ------------
    # (hoisted out of the per-layer body; only compact int32 index vectors are
    #  read from HBM, never O(E*N) incidence matrices).
    iota_n_en = jax.lax.broadcasted_iota(jnp.int32, (E, N), 1)     # [e, n] = n
    src_oh = (iota_n_en == src_ref[...]).astype(jnp.float32)       # [E, N]
    dst_oh = (iota_n_en == dstc_ref[...]).astype(jnp.float32)      # [E, N]
    # FIX: node index must vary along axis 0 here (was dimension=1 before).
    iota_n_ne = jax.lax.broadcasted_iota(jnp.int32, (N, E), 0)     # [n, e] = n
    scat = (iota_n_ne == dstr_ref[...]).astype(jnp.float32)        # [N, E], (n == dst[e])

    # ---- node embedding ------------------------------------------------------
    v = _silu(dot(v0_ref[...], w_emb_ref[...]) + b_emb_ref[...])   # [N, H]

    # ---- conv layers (ConvFunc_CGCNN_edgeMLP), statically unrolled -----------
    # conv_number is tiny and static, so a trace-time unroll is equivalent to
    # lax.fori_loop(..., unroll=True) and gives the scheduler full visibility.
    for l in range(conv_number):
        # edgemlp(edge_feats); Linear bias + eval-BN affine pre-folded.
        hm = _silu(dot(e_ref[...], we_ref[l]) + be_ref[l])          # [E, H]

        # Hoisted node-space projection: one lane-dense [H, 4H=128] matmul that
        # fuses the src/dst halves of both `mlp` and `screen` (runs over N rows
        # instead of E rows).
        proj = dot(v, wn_ref[l])                                    # [N, 4H]

        lin = (dot(src_oh, proj[:, :2 * H]) + dot(dst_oh, proj[:, 2 * H:])
               + dot(hm, wec_ref[l]) + bc_ref[l])                   # [E, 2H]

        # first H columns -> mlp (silu), second H -> screen (softplus)
        h_up = _silu(lin[:, :H]) * _softplus(lin[:, H:])            # [E, H]

        # update_all(copy_e, sum): scatter-sum messages onto destination nodes.
        agg = dot(scat, h_up)                                       # [N, H]

        # softplus(node_bn(agg) + node_feats)
        v = _softplus(agg * bns_ref[l] + bnt_ref[l] + v)

    # ---- head ----------------------------------------------------------------
    vs = dot(pool_ref[...], v)                                      # AvgPooling -> [G, H]
    for i in range(n_fc):                                           # FC MLP layers
        vs = _silu(dot(vs, fc_refs[2 * i][...]) + fc_refs[2 * i + 1][...])
    out_ref[...] = dot(vs, wp_ref[...]) + bp_ref[...]               # pred_target


def cgcnn_forward(v0, e, src, dst, pool, prep, conv_number, n_fc):
    E = e.shape[0]
    G = pool.shape[0]

    inputs = [
        v0, e,
        src.reshape(E, 1).astype(jnp.int32),   # gather-src mask build (rows)
        dst.reshape(E, 1).astype(jnp.int32),   # gather-dst mask build (rows)
        dst.reshape(1, E).astype(jnp.int32),   # scatter mask build (lane-dense)
        pool,
        prep['w_emb'], prep['b_emb'],
        prep['we'], prep['be'], prep['wn'], prep['wec'],
        prep['bc'], prep['bns'], prep['bnt'],
    ]
    for (W, b) in prep['fc']:
        inputs += [W, b]
    inputs += [prep['wp'], prep['bp']]
    inputs = [jnp.asarray(x) for x in inputs]

    # Trim the VMEM budget to actual usage (+ headroom) instead of a flat 32 MiB.
    in_bytes = sum(int(x.size) * jnp.dtype(x.dtype).itemsize for x in inputs)
    vmem_limit = int(max(4 << 20, 4 * in_bytes + (1 << 20)))

    kernel = functools.partial(cgcnn_kernel, conv_number, n_fc)

    # Single invocation (no grid): at this size the model is overhead-bound, so
    # all (tiny) weights live in VMEM for the whole kernel and masks are built
    # once.  See TODO(synk) at the top for the large-graph / v7x tiling plan.
    return pl.pallas_call(
        kernel,
        out_shape=jax.ShapeDtypeStruct((G, 1), jnp.float32),
        compiler_params=pltpu.CompilerParams(vmem_limit_bytes=vmem_limit),
    )(*inputs)


# ------------------- parameter folding / packing (JAX level) ------------------

def prepare_kernel_params(params, H):
    def fold(W, b, s, t):
        # Linear followed by eval-mode BatchNorm1d folds exactly into the weights:
        # ((x@W + b) * s + t) == x @ (W*s) + (b*s + t)
        return W * s, b * s + t

    w_emb, b_emb = fold(*params['embed'])

    we, be, wn, wec, bc, bns, bnt = [], [], [], [], [], [], []
    for c in params['convs']:
        Wef, bef = fold(*c['edgemlp'])
        we.append(Wef)
        be.append(bef)
        Wm, bm, sm, tm = c['mlp']
        Ws, bs_, ss, ts = c['screen']
        Wm_f, bm_f = Wm * sm, bm * sm + tm
        Ws_f, bs_f = Ws * ss, bs_ * ss + ts
        # node-space projection weight, columns = [src_mlp | src_scr | dst_mlp | dst_scr]
        wn.append(jnp.concatenate(
            [Wm_f[:H], Ws_f[:H], Wm_f[H:2 * H], Ws_f[H:2 * H]], axis=1))   # [H, 4H]
        wec.append(jnp.concatenate([Wm_f[2 * H:], Ws_f[2 * H:]], axis=1))  # [H, 2H]
        bc.append(jnp.concatenate([bm_f, bs_f], axis=1))                   # [1, 2H]
        s_bn, t_bn = c['bn']
        bns.append(s_bn)
        bnt.append(t_bn)

    return {
        'w_emb': w_emb, 'b_emb': b_emb,
        'we': jnp.stack(we), 'be': jnp.stack(be),
        'wn': jnp.stack(wn), 'wec': jnp.stack(wec), 'bc': jnp.stack(bc),
        'bns': jnp.stack(bns), 'bnt': jnp.stack(bnt),
        'fc': [fold(*p) for p in params['fc']],
        'wp': params['pred'][0], 'bp': params['pred'][1],
    }


# --------------------------- pure-JAX reference -------------------------------
# Mirrors the PyTorch module structure (concat + single Linear, unfolded BN).

def reference_forward(v0, e, src, dst, graph_id, n_graphs, params):
    def mlp(x, p, act):
        W, b, s, t = p
        return act((x @ W + b) * s + t)

    N = v0.shape[0]
    v = mlp(v0, params['embed'], _silu)
    for c in params['convs']:
        hm = mlp(e, c['edgemlp'], _silu)
        hcomb = jnp.concatenate([v[src], v[dst], hm], axis=1)
        h_mlp = mlp(hcomb, c['mlp'], _silu)
        h_scr = mlp(hcomb, c['screen'], _softplus)
        h_up = h_mlp * h_scr
        agg = jnp.zeros((N, h_up.shape[1]), jnp.float32).at[dst].add(h_up)
        s_bn, t_bn = c['bn']
        v = _softplus(agg * s_bn + t_bn + v)

    sums = jnp.zeros((n_graphs, v.shape[1]), jnp.float32).at[graph_id].add(v)
    counts = jnp.zeros((n_graphs, 1), jnp.float32).at[graph_id].add(1.0)
    vs = sums / counts

    for p in params['fc']:
        vs = mlp(vs, p, _silu)

    Wp, bp = params['pred']
    return vs @ Wp + bp


# ------------------------------------ main ------------------------------------

if __name__ == "__main__":
    # Model hyper-parameters (small, consistent with the module __init__).
    F_n, F_e, H = 16, 12, 32          # node_feat_length, edge_feat_length, embed_feat_length
    conv_number = 2
    fc_lens = [32, 16]                # fc widths appended to [embed_feat_length]

    # Small batched graph: 2 graphs x 8 nodes, 20 directed edges per graph.
    nodes_per_graph, edges_per_graph, G = 8, 20, 2
    N = nodes_per_graph * G
    E = edges_per_graph * G

    key = jax.random.PRNGKey(0)
    keys = jax.random.split(key, 16)

    v0 = jax.random.normal(keys[0], (N, F_n), jnp.float32)    # g.ndata['h_v']
    e = jax.random.normal(keys[1], (E, F_e), jnp.float32)     # g.edata['h_e']

    src = jnp.concatenate([
        jax.random.randint(keys[2 + g], (edges_per_graph,),
                           g * nodes_per_graph, (g + 1) * nodes_per_graph)
        for g in range(G)]).astype(jnp.int32)
    dst = jnp.concatenate([
        jax.random.randint(keys[4 + g], (edges_per_graph,),
                           g * nodes_per_graph, (g + 1) * nodes_per_graph)
        for g in range(G)]).astype(jnp.int32)
    graph_id = jnp.repeat(jnp.arange(G), nodes_per_graph).astype(jnp.int32)

    # AvgPooling matrix [G, N] (tiny; per-graph mean over nodes).
    memb = jnp.transpose(jax.nn.one_hot(graph_id, G, dtype=jnp.float32))
    pool = memb / jnp.sum(memb, axis=1, keepdims=True)

    # ---- deterministic parameter construction (eval-mode BN as affine) ----
    pkeys = list(jax.random.split(keys[10], 64))
    kiter = iter(pkeys)

    def bn_affine(kk, d):
        k3, k4, k5, k6 = jax.random.split(kk, 4)
        gamma = 1.0 + 0.1 * jax.random.normal(k3, (1, d), jnp.float32)
        beta = 0.1 * jax.random.normal(k4, (1, d), jnp.float32)
        mean = 0.1 * jax.random.normal(k5, (1, d), jnp.float32)
        var = 1.0 + 0.1 * jnp.abs(jax.random.normal(k6, (1, d), jnp.float32))
        scale = gamma / jnp.sqrt(var + 1e-5)
        shift = beta - mean * scale
        return scale, shift

    def mlp_params(d_in, d_out):
        kk = next(kiter)
        k1, k2, k3 = jax.random.split(kk, 3)
        W = 0.1 * jax.random.normal(k1, (d_in, d_out), jnp.float32)
        b = 0.1 * jax.random.normal(k2, (1, d_out), jnp.float32)
        scale, shift = bn_affine(k3, d_out)
        return W, b, scale, shift

    embed_p = mlp_params(F_n, H)                               # node_embedding

    convs = []
    for _ in range(conv_number):                               # ConvFunc_CGCNN_edgeMLP
        convs.append({
            'edgemlp': mlp_params(F_e, H),
            'mlp': mlp_params(3 * H, H),
            'screen': mlp_params(3 * H, H),
            'bn': bn_affine(next(kiter), H),
        })

    dims = [H] + fc_lens
    fc_params = [mlp_params(dims[i], dims[i + 1]) for i in range(len(dims) - 1)]
    n_fc = len(fc_params)

    kp1, kp2 = jax.random.split(next(kiter), 2)
    Wp = 0.1 * jax.random.normal(kp1, (dims[-1], 1), jnp.float32)
    bp = 0.1 * jax.random.normal(kp2, (1, 1), jnp.float32)

    params = {'embed': embed_p, 'convs': convs, 'fc': fc_params, 'pred': (Wp, bp)}
    prep = prepare_kernel_params(params, H)

    # ---- run Pallas kernel ----
    out = cgcnn_forward(v0, e, src, dst, pool, prep, conv_number, n_fc)
    out = jax.block_until_ready(out)

    # ---- verify against the module-faithful pure-JAX reference ----
    ref = reference_forward(v0, e, src, dst, graph_id, G, params)
    err = float(jnp.max(jnp.abs(out - ref)))
    assert out.shape == (G, 1), out.shape
    # Exact-arithmetic error of this path is ~1e-6; the slack below only covers
    # single-bf16-pass MXU truncation at DEFAULT matmul precision on hardware
    # (forced HIGHEST precision was dropped per the performance review) plus the
    # benign fp reassociation from BN/weight folding and the matmul fusion.
    assert err < 2e-2, f"kernel/reference mismatch: max abs err = {err}"

    print("KERNEL_OK")
</pallas_src>

<mosaic_0001>
module attributes {stable_mosaic.version = 11 : i64} {
  func.func @cgcnn_kernel(%arg0: memref<16x16xf32, #tpu.memory_space<vmem>>, %arg1: memref<40x12xf32, #tpu.memory_space<vmem>>, %arg2: memref<40x1xi32, #tpu.memory_space<vmem>>, %arg3: memref<40x1xi32, #tpu.memory_space<vmem>>, %arg4: memref<1x40xi32, #tpu.memory_space<vmem>>, %arg5: memref<2x16xf32, #tpu.memory_space<vmem>>, %arg6: memref<16x32xf32, #tpu.memory_space<vmem>>, %arg7: memref<1x32xf32, #tpu.memory_space<vmem>>, %arg8: memref<2x12x32xf32, #tpu.memory_space<vmem>>, %arg9: memref<2x1x32xf32, #tpu.memory_space<vmem>>, %arg10: memref<2x32x128xf32, #tpu.memory_space<vmem>>, %arg11: memref<2x32x64xf32, #tpu.memory_space<vmem>>, %arg12: memref<2x1x64xf32, #tpu.memory_space<vmem>>, %arg13: memref<2x1x32xf32, #tpu.memory_space<vmem>>, %arg14: memref<2x1x32xf32, #tpu.memory_space<vmem>>, %arg15: memref<32x32xf32, #tpu.memory_space<vmem>>, %arg16: memref<1x32xf32, #tpu.memory_space<vmem>>, %arg17: memref<32x16xf32, #tpu.memory_space<vmem>>, %arg18: memref<1x16xf32, #tpu.memory_space<vmem>>, %arg19: memref<16x1xf32, #tpu.memory_space<vmem>>, %arg20: memref<1x1xf32, #tpu.memory_space<vmem>>, %arg21: memref<2x1xf32, #tpu.memory_space<vmem>>) attributes {dimension_semantics = [], scalar_prefetch = 0 : i64, scratch_operands = 0 : i64, tpu.core_type = #tpu.core_type<tc>} {
    %0 = tpu.iota {dimensions = array<i32: 1>} : vector<40x16xi32>
    %c0 = arith.constant 0 : index
    %c0_0 = arith.constant 0 : index
    %1 = vector.load %arg2[%c0, %c0_0] : memref<40x1xi32, #tpu.memory_space<vmem>>, vector<40x1xi32>
    %2 = vector.broadcast %1 : vector<40x1xi32> to vector<40x16xi32>
    %3 = arith.cmpi eq, %0, %2 : vector<40x16xi32>
    %4 = arith.extui %3 : vector<40x16xi1> to vector<40x16xi32>
    %5 = arith.sitofp %4 : vector<40x16xi32> to vector<40x16xf32>
    %c0_1 = arith.constant 0 : index
    %c0_2 = arith.constant 0 : index
    %6 = vector.load %arg3[%c0_1, %c0_2] : memref<40x1xi32, #tpu.memory_space<vmem>>, vector<40x1xi32>
    %7 = vector.broadcast %6 : vector<40x1xi32> to vector<40x16xi32>
    %8 = arith.cmpi eq, %0, %7 : vector<40x16xi32>
    %9 = arith.extui %8 : vector<40x16xi1> to vector<40x16xi32>
    %10 = arith.sitofp %9 : vector<40x16xi32> to vector<40x16xf32>
    %11 = tpu.iota {dimensions = array<i32: 0>} : vector<16x40xi32>
    %c0_3 = arith.constant 0 : index
    %c0_4 = arith.constant 0 : index
    %12 = vector.load %arg4[%c0_3, %c0_4] : memref<1x40xi32, #tpu.memory_space<vmem>>, vector<1x40xi32>
    %13 = vector.broadcast %12 : vector<1x40xi32> to vector<16x40xi32>
    %14 = arith.cmpi eq, %11, %13 : vector<16x40xi32>
    %15 = arith.extui %14 : vector<16x40xi1> to vector<16x40xi32>
    %16 = arith.sitofp %15 : vector<16x40xi32> to vector<16x40xf32>
    %c0_5 = arith.constant 0 : index
    %c0_6 = arith.constant 0 : index
    %17 = vector.load %arg0[%c0_5, %c0_6] : memref<16x16xf32, #tpu.memory_space<vmem>>, vector<16x16xf32>
    %c0_7 = arith.constant 0 : index
    %c0_8 = arith.constant 0 : index
    %18 = vector.load %arg6[%c0_7, %c0_8] : memref<16x32xf32, #tpu.memory_space<vmem>>, vector<16x32xf32>
    %cst = arith.constant dense<0.000000e+00> : vector<16x32xf32>
    %19 = tpu.matmul %17, %18, %cst {dimension_numbers = #tpu.dot_dimension_numbers<[1], [0], [0], [1], [0, 0, 1, 1], [], []>} : vector<16x16xf32>, vector<16x32xf32>, vector<16x32xf32> -> vector<16x32xf32>
    %c0_9 = arith.constant 0 : index
    %c0_10 = arith.constant 0 : index
    %20 = vector.load %arg7[%c0_9, %c0_10] : memref<1x32xf32, #tpu.memory_space<vmem>>, vector<1x32xf32>
    %21 = vector.broadcast %20 : vector<1x32xf32> to vector<16x32xf32>
    %22 = arith.addf %19, %21 : vector<16x32xf32>
    %cst_11 = arith.constant 0.000000e+00 : f32
    %23 = vector.broadcast %cst_11 : f32 to vector<16x32xf32>
    %24 = arith.subf %23, %22 : vector<16x32xf32>
    %25 = math.exp %24 : vector<16x32xf32>
    %cst_12 = arith.constant 1.000000e+00 : f32
    %26 = vector.broadcast %cst_12 : f32 to vector<16x32xf32>
    %27 = arith.addf %26, %25 : vector<16x32xf32>
    %cst_13 = arith.constant 1.000000e+00 : f32
    %28 = vector.broadcast %cst_13 : f32 to vector<16x32xf32>
    %29 = arith.divf %28, %27 : vector<16x32xf32>
    %30 = arith.mulf %22, %29 : vector<16x32xf32>
    %c0_14 = arith.constant 0 : index
    %c0_15 = arith.constant 0 : index
    %31 = vector.load %arg1[%c0_14, %c0_15] : memref<40x12xf32, #tpu.memory_space<vmem>>, vector<40x12xf32>
    %c0_16 = arith.constant 0 : index
    %c0_17 = arith.constant 0 : index
    %c0_18 = arith.constant 0 : index
    %32 = vector.load %arg8[%c0_16, %c0_17, %c0_18] : memref<2x12x32xf32, #tpu.memory_space<vmem>>, vector<1x12x32xf32>
    %33 = vector.shape_cast %32 : vector<1x12x32xf32> to vector<12x32xf32>
    %cst_19 = arith.constant dense<0.000000e+00> : vector<40x32xf32>
    %34 = tpu.matmul %31, %33, %cst_19 {dimension_numbers = #tpu.dot_dimension_numbers<[1], [0], [0], [1], [0, 0, 1, 1], [], []>} : vector<40x12xf32>, vector<12x32xf32>, vector<40x32xf32> -> vector<40x32xf32>
    %c0_20 = arith.constant 0 : index
    %c0_21 = arith.constant 0 : index
    %c0_22 = arith.constant 0 : index
    %35 = vector.load %arg9[%c0_20, %c0_21, %c0_22] : memref<2x1x32xf32, #tpu.memory_space<vmem>>, vector<1x1x32xf32>
    %36 = vector.shape_cast %35 : vector<1x1x32xf32> to vector<1x32xf32>
    %37 = vector.broadcast %36 : vector<1x32xf32> to vector<40x32xf32>
    %38 = arith.addf %34, %37 : vector<40x32xf32>
    %cst_23 = arith.constant 0.000000e+00 : f32
    %39 = vector.broadcast %cst_23 : f32 to vector<40x32xf32>
    %40 = arith.subf %39, %38 : vector<40x32xf32>
    %41 = math.exp %40 : vector<40x32xf32>
    %cst_24 = arith.constant 1.000000e+00 : f32
    %42 = vector.broadcast %cst_24 : f32 to vector<40x32xf32>
    %43 = arith.addf %42, %41 : vector<40x32xf32>
    %cst_25 = arith.constant 1.000000e+00 : f32
    %44 = vector.broadcast %cst_25 : f32 to vector<40x32xf32>
    %45 = arith.divf %44, %43 : vector<40x32xf32>
    %46 = arith.mulf %38, %45 : vector<40x32xf32>
    %c0_26 = arith.constant 0 : index
    %c0_27 = arith.constant 0 : index
    %c0_28 = arith.constant 0 : index
    %47 = vector.load %arg10[%c0_26, %c0_27, %c0_28] : memref<2x32x128xf32, #tpu.memory_space<vmem>>, vector<1x32x128xf32>
    %48 = vector.shape_cast %47 : vector<1x32x128xf32> to vector<32x128xf32>
    %cst_29 = arith.constant dense<0.000000e+00> : vector<16x128xf32>
    %49 = tpu.matmul %30, %48, %cst_29 {dimension_numbers = #tpu.dot_dimension_numbers<[1], [0], [0], [1], [0, 0, 1, 1], [], []>} : vector<16x32xf32>, vector<32x128xf32>, vector<16x128xf32> -> vector<16x128xf32>
    %50 = vector.extract_strided_slice %49 {offsets = [0, 0], sizes = [16, 64], strides = [1, 1]} : vector<16x128xf32> to vector<16x64xf32>
    %cst_30 = arith.constant dense<0.000000e+00> : vector<40x64xf32>
    %51 = tpu.matmul %5, %50, %cst_30 {dimension_numbers = #tpu.dot_dimension_numbers<[1], [0], [0], [1], [0, 0, 1, 1], [], []>} : vector<40x16xf32>, vector<16x64xf32>, vector<40x64xf32> -> vector<40x64xf32>
    %52 = vector.extract_strided_slice %49 {offsets = [0, 64], sizes = [16, 64], strides = [1, 1]} : vector<16x128xf32> to vector<16x64xf32>
    %cst_31 = arith.constant dense<0.000000e+00> : vector<40x64xf32>
    %53 = tpu.matmul %10, %52, %cst_31 {dimension_numbers = #tpu.dot_dimension_numbers<[1], [0], [0], [1], [0, 0, 1, 1], [], []>} : vector<40x16xf32>, vector<16x64xf32>, vector<40x64xf32> -> vector<40x64xf32>
    %54 = arith.addf %51, %53 : vector<40x64xf32>
    %c0_32 = arith.constant 0 : index
    %c0_33 = arith.constant 0 : index
    %c0_34 = arith.constant 0 : index
    %55 = vector.load %arg11[%c0_32, %c0_33, %c0_34] : memref<2x32x64xf32, #tpu.memory_space<vmem>>, vector<1x32x64xf32>
    %56 = vector.shape_cast %55 : vector<1x32x64xf32> to vector<32x64xf32>
    %cst_35 = arith.constant dense<0.000000e+00> : vector<40x64xf32>
    %57 = tpu.matmul %46, %56, %cst_35 {dimension_numbers = #tpu.dot_dimension_numbers<[1], [0], [0], [1], [0, 0, 1, 1], [], []>} : vector<40x32xf32>, vector<32x64xf32>, vector<40x64xf32> -> vector<40x64xf32>
    %58 = arith.addf %54, %57 : vector<40x64xf32>
    %c0_36 = arith.constant 0 : index
    %c0_37 = arith.constant 0 : index
    %c0_38 = arith.constant 0 : index
    %59 = vector.load %arg12[%c0_36, %c0_37, %c0_38] : memref<2x1x64xf32, #tpu.memory_space<vmem>>, vector<1x1x64xf32>
    %60 = vector.shape_cast %59 : vector<1x1x64xf32> to vector<1x64xf32>
    %61 = vector.broadcast %60 : vector<1x64xf32> to vector<40x64xf32>
    %62 = arith.addf %58, %61 : vector<40x64xf32>
    %63 = vector.extract_strided_slice %62 {offsets = [0, 0], sizes = [40, 32], strides = [1, 1]} : vector<40x64xf32> to vector<40x32xf32>
    %cst_39 = arith.constant 0.000000e+00 : f32
    %64 = vector.broadcast %cst_39 : f32 to vector<40x32xf32>
    %65 = arith.subf %64, %63 : vector<40x32xf32>
    %66 = math.exp %65 : vector<40x32xf32>
    %cst_40 = arith.constant 1.000000e+00 : f32
    %67 = vector.broadcast %cst_40 : f32 to vector<40x32xf32>
    %68 = arith.addf %67, %66 : vector<40x32xf32>
    %cst_41 = arith.constant 1.000000e+00 : f32
    %69 = vector.broadcast %cst_41 : f32 to vector<40x32xf32>
    %70 = arith.divf %69, %68 : vector<40x32xf32>
    %71 = arith.mulf %63, %70 : vector<40x32xf32>
    %72 = vector.extract_strided_slice %62 {offsets = [0, 32], sizes = [40, 32], strides = [1, 1]} : vector<40x64xf32> to vector<40x32xf32>
    %73 = math.absf %72 : vector<40x32xf32>
    %cst_42 = arith.constant 0.000000e+00 : f32
    %74 = vector.broadcast %cst_42 : f32 to vector<40x32xf32>
    %75 = arith.subf %74, %73 : vector<40x32xf32>
    %76 = math.exp %75 : vector<40x32xf32>
    %77 = math.log1p %76 : vector<40x32xf32>
    %cst_43 = arith.constant 0.000000e+00 : f32
    %78 = vector.broadcast %cst_43 : f32 to vector<40x32xf32>
    %79 = arith.maximumf %72, %78 : vector<40x32xf32>
    %80 = arith.addf %77, %79 : vector<40x32xf32>
    %cst_44 = arith.constant 2.000000e+01 : f32
    %81 = vector.broadcast %cst_44 : f32 to vector<40x32xf32>
    %82 = arith.cmpf ogt, %72, %81 : vector<40x32xf32>
    %83 = arith.select %82, %72, %80 : vector<40x32xi1>, vector<40x32xf32>
    %84 = arith.mulf %71, %83 : vector<40x32xf32>
    %cst_45 = arith.constant dense<0.000000e+00> : vector<16x32xf32>
    %85 = tpu.matmul %16, %84, %cst_45 {dimension_numbers = #tpu.dot_dimension_numbers<[1], [0], [0], [1], [0, 0, 1, 1], [], []>} : vector<16x40xf32>, vector<40x32xf32>, vector<16x32xf32> -> vector<16x32xf32>
    %c0_46 = arith.constant 0 : index
    %c0_47 = arith.constant 0 : index
    %c0_48 = arith.constant 0 : index
    %86 = vector.load %arg13[%c0_46, %c0_47, %c0_48] : memref<2x1x32xf32, #tpu.memory_space<vmem>>, vector<1x1x32xf32>
    %87 = vector.shape_cast %86 : vector<1x1x32xf32> to vector<1x32xf32>
    %88 = vector.broadcast %87 : vector<1x32xf32> to vector<16x32xf32>
    %89 = arith.mulf %85, %88 : vector<16x32xf32>
    %c0_49 = arith.constant 0 : index
    %c0_50 = arith.constant 0 : index
    %c0_51 = arith.constant 0 : index
    %90 = vector.load %arg14[%c0_49, %c0_50, %c0_51] : memref<2x1x32xf32, #tpu.memory_space<vmem>>, vector<1x1x32xf32>
    %91 = vector.shape_cast %90 : vector<1x1x32xf32> to vector<1x32xf32>
    %92 = vector.broadcast %91 : vector<1x32xf32> to vector<16x32xf32>
    %93 = arith.addf %89, %92 : vector<16x32xf32>
    %94 = arith.addf %93, %30 : vector<16x32xf32>
    %95 = math.absf %94 : vector<16x32xf32>
    %cst_52 = arith.constant 0.000000e+00 : f32
    %96 = vector.broadcast %cst_52 : f32 to vector<16x32xf32>
    %97 = arith.subf %96, %95 : vector<16x32xf32>
    %98 = math.exp %97 : vector<16x32xf32>
    %99 = math.log1p %98 : vector<16x32xf32>
    %cst_53 = arith.constant 0.000000e+00 : f32
    %100 = vector.broadcast %cst_53 : f32 to vector<16x32xf32>
    %101 = arith.maximumf %94, %100 : vector<16x32xf32>
    %102 = arith.addf %99, %101 : vector<16x32xf32>
    %cst_54 = arith.constant 2.000000e+01 : f32
    %103 = vector.broadcast %cst_54 : f32 to vector<16x32xf32>
    %104 = arith.cmpf ogt, %94, %103 : vector<16x32xf32>
    %105 = arith.select %104, %94, %102 : vector<16x32xi1>, vector<16x32xf32>
    %c0_55 = arith.constant 0 : index
    %c0_56 = arith.constant 0 : index
    %106 = vector.load %arg1[%c0_55, %c0_56] : memref<40x12xf32, #tpu.memory_space<vmem>>, vector<40x12xf32>
    %c1 = arith.constant 1 : index
    %c0_57 = arith.constant 0 : index
    %c0_58 = arith.constant 0 : index
    %107 = vector.load %arg8[%c1, %c0_57, %c0_58] : memref<2x12x32xf32, #tpu.memory_space<vmem>>, vector<1x12x32xf32>
    %108 = vector.shape_cast %107 : vector<1x12x32xf32> to vector<12x32xf32>
    %cst_59 = arith.constant dense<0.000000e+00> : vector<40x32xf32>
    %109 = tpu.matmul %106, %108, %cst_59 {dimension_numbers = #tpu.dot_dimension_numbers<[1], [0], [0], [1], [0, 0, 1, 1], [], []>} : vector<40x12xf32>, vector<12x32xf32>, vector<40x32xf32> -> vector<40x32xf32>
    %c1_60 = arith.constant 1 : index
    %c0_61 = arith.constant 0 : index
    %c0_62 = arith.constant 0 : index
    %110 = vector.load %arg9[%c1_60, %c0_61, %c0_62] : memref<2x1x32xf32, #tpu.memory_space<vmem>>, vector<1x1x32xf32>
    %111 = vector.shape_cast %110 : vector<1x1x32xf32> to vector<1x32xf32>
    %112 = vector.broadcast %111 : vector<1x32xf32> to vector<40x32xf32>
    %113 = arith.addf %109, %112 : vector<40x32xf32>
    %cst_63 = arith.constant 0.000000e+00 : f32
    %114 = vector.broadcast %cst_63 : f32 to vector<40x32xf32>
    %115 = arith.subf %114, %113 : vector<40x32xf32>
    %116 = math.exp %115 : vector<40x32xf32>
    %cst_64 = arith.constant 1.000000e+00 : f32
    %117 = vector.broadcast %cst_64 : f32 to vector<40x32xf32>
    %118 = arith.addf %117, %116 : vector<40x32xf32>
    %cst_65 = arith.constant 1.000000e+00 : f32
    %119 = vector.broadcast %cst_65 : f32 to vector<40x32xf32>
    %120 = arith.divf %119, %118 : vector<40x32xf32>
    %121 = arith.mulf %113, %120 : vector<40x32xf32>
    %c1_66 = arith.constant 1 : index
    %c0_67 = arith.constant 0 : index
    %c0_68 = arith.constant 0 : index
    %122 = vector.load %arg10[%c1_66, %c0_67, %c0_68] : memref<2x32x128xf32, #tpu.memory_space<vmem>>, vector<1x32x128xf32>
    %123 = vector.shape_cast %122 : vector<1x32x128xf32> to vector<32x128xf32>
    %cst_69 = arith.constant dense<0.000000e+00> : vector<16x128xf32>
    %124 = tpu.matmul %105, %123, %cst_69 {dimension_numbers = #tpu.dot_dimension_numbers<[1], [0], [0], [1], [0, 0, 1, 1], [], []>} : vector<16x32xf32>, vector<32x128xf32>, vector<16x128xf32> -> vector<16x128xf32>
    %125 = vector.extract_strided_slice %124 {offsets = [0, 0], sizes = [16, 64], strides = [1, 1]} : vector<16x128xf32> to vector<16x64xf32>
    %cst_70 = arith.constant dense<0.000000e+00> : vector<40x64xf32>
    %126 = tpu.matmul %5, %125, %cst_70 {dimension_numbers = #tpu.dot_dimension_numbers<[1], [0], [0], [1], [0, 0, 1, 1], [], []>} : vector<40x16xf32>, vector<16x64xf32>, vector<40x64xf32> -> vector<40x64xf32>
    %127 = vector.extract_strided_slice %124 {offsets = [0, 64], sizes = [16, 64], strides = [1, 1]} : vector<16x128xf32> to vector<16x64xf32>
    %cst_71 = arith.constant dense<0.000000e+00> : vector<40x64xf32>
    %128 = tpu.matmul %10, %127, %cst_71 {dimension_numbers = #tpu.dot_dimension_numbers<[1], [0], [0], [1], [0, 0, 1, 1], [], []>} : vector<40x16xf32>, vector<16x64xf32>, vector<40x64xf32> -> vector<40x64xf32>
    %129 = arith.addf %126, %128 : vector<40x64xf32>
    %c1_72 = arith.constant 1 : index
    %c0_73 = arith.constant 0 : index
    %c0_74 = arith.constant 0 : index
    %130 = vector.load %arg11[%c1_72, %c0_73, %c0_74] : memref<2x32x64xf32, #tpu.memory_space<vmem>>, vector<1x32x64xf32>
    %131 = vector.shape_cast %130 : vector<1x32x64xf32> to vector<32x64xf32>
    %cst_75 = arith.constant dense<0.000000e+00> : vector<40x64xf32>
    %132 = tpu.matmul %121, %131, %cst_75 {dimension_numbers = #tpu.dot_dimension_numbers<[1], [0], [0], [1], [0, 0, 1, 1], [], []>} : vector<40x32xf32>, vector<32x64xf32>, vector<40x64xf32> -> vector<40x64xf32>
    %133 = arith.addf %129, %132 : vector<40x64xf32>
    %c1_76 = arith.constant 1 : index
    %c0_77 = arith.constant 0 : index
    %c0_78 = arith.constant 0 : index
    %134 = vector.load %arg12[%c1_76, %c0_77, %c0_78] : memref<2x1x64xf32, #tpu.memory_space<vmem>>, vector<1x1x64xf32>
    %135 = vector.shape_cast %134 : vector<1x1x64xf32> to vector<1x64xf32>
    %136 = vector.broadcast %135 : vector<1x64xf32> to vector<40x64xf32>
    %137 = arith.addf %133, %136 : vector<40x64xf32>
    %138 = vector.extract_strided_slice %137 {offsets = [0, 0], sizes = [40, 32], strides = [1, 1]} : vector<40x64xf32> to vector<40x32xf32>
    %cst_79 = arith.constant 0.000000e+00 : f32
    %139 = vector.broadcast %cst_79 : f32 to vector<40x32xf32>
    %140 = arith.subf %139, %138 : vector<40x32xf32>
    %141 = math.exp %140 : vector<40x32xf32>
    %cst_80 = arith.constant 1.000000e+00 : f32
    %142 = vector.broadcast %cst_80 : f32 to vector<40x32xf32>
    %143 = arith.addf %142, %141 : vector<40x32xf32>
    %cst_81 = arith.constant 1.000000e+00 : f32
    %144 = vector.broadcast %cst_81 : f32 to vector<40x32xf32>
    %145 = arith.divf %144, %143 : vector<40x32xf32>
    %146 = arith.mulf %138, %145 : vector<40x32xf32>
    %147 = vector.extract_strided_slice %137 {offsets = [0, 32], sizes = [40, 32], strides = [1, 1]} : vector<40x64xf32> to vector<40x32xf32>
    %148 = math.absf %147 : vector<40x32xf32>
    %cst_82 = arith.constant 0.000000e+00 : f32
    %149 = vector.broadcast %cst_82 : f32 to vector<40x32xf32>
    %150 = arith.subf %149, %148 : vector<40x32xf32>
    %151 = math.exp %150 : vector<40x32xf32>
    %152 = math.log1p %151 : vector<40x32xf32>
    %cst_83 = arith.constant 0.000000e+00 : f32
    %153 = vector.broadcast %cst_83 : f32 to vector<40x32xf32>
    %154 = arith.maximumf %147, %153 : vector<40x32xf32>
    %155 = arith.addf %152, %154 : vector<40x32xf32>
    %cst_84 = arith.constant 2.000000e+01 : f32
    %156 = vector.broadcast %cst_84 : f32 to vector<40x32xf32>
    %157 = arith.cmpf ogt, %147, %156 : vector<40x32xf32>
    %158 = arith.select %157, %147, %155 : vector<40x32xi1>, vector<40x32xf32>
    %159 = arith.mulf %146, %158 : vector<40x32xf32>
    %cst_85 = arith.constant dense<0.000000e+00> : vector<16x32xf32>
    %160 = tpu.matmul %16, %159, %cst_85 {dimension_numbers = #tpu.dot_dimension_numbers<[1], [0], [0], [1], [0, 0, 1, 1], [], []>} : vector<16x40xf32>, vector<40x32xf32>, vector<16x32xf32> -> vector<16x32xf32>
    %c1_86 = arith.constant 1 : index
    %c0_87 = arith.constant 0 : index
    %c0_88 = arith.constant 0 : index
    %161 = vector.load %arg13[%c1_86, %c0_87, %c0_88] : memref<2x1x32xf32, #tpu.memory_space<vmem>>, vector<1x1x32xf32>
    %162 = vector.shape_cast %161 : vector<1x1x32xf32> to vector<1x32xf32>
    %163 = vector.broadcast %162 : vector<1x32xf32> to vector<16x32xf32>
    %164 = arith.mulf %160, %163 : vector<16x32xf32>
    %c1_89 = arith.constant 1 : index
    %c0_90 = arith.constant 0 : index
    %c0_91 = arith.constant 0 : index
    %165 = vector.load %arg14[%c1_89, %c0_90, %c0_91] : memref<2x1x32xf32, #tpu.memory_space<vmem>>, vector<1x1x32xf32>
    %166 = vector.shape_cast %165 : vector<1x1x32xf32> to vector<1x32xf32>
    %167 = vector.broadcast %166 : vector<1x32xf32> to vector<16x32xf32>
    %168 = arith.addf %164, %167 : vector<16x32xf32>
    %169 = arith.addf %168, %105 : vector<16x32xf32>
    %170 = math.absf %169 : vector<16x32xf32>
    %cst_92 = arith.constant 0.000000e+00 : f32
    %171 = vector.broadcast %cst_92 : f32 to vector<16x32xf32>
    %172 = arith.subf %171, %170 : vector<16x32xf32>
    %173 = math.exp %172 : vector<16x32xf32>
    %174 = math.log1p %173 : vector<16x32xf32>
    %cst_93 = arith.constant 0.000000e+00 : f32
    %175 = vector.broadcast %cst_93 : f32 to vector<16x32xf32>
    %176 = arith.maximumf %169, %175 : vector<16x32xf32>
    %177 = arith.addf %174, %176 : vector<16x32xf32>
    %cst_94 = arith.constant 2.000000e+01 : f32
    %178 = vector.broadcast %cst_94 : f32 to vector<16x32xf32>
    %179 = arith.cmpf ogt, %169, %178 : vector<16x32xf32>
    %180 = arith.select %179, %169, %177 : vector<16x32xi1>, vector<16x32xf32>
    %c0_95 = arith.constant 0 : index
    %c0_96 = arith.constant 0 : index
    %181 = vector.load %arg5[%c0_95, %c0_96] : memref<2x16xf32, #tpu.memory_space<vmem>>, vector<2x16xf32>
    %cst_97 = arith.constant dense<0.000000e+00> : vector<2x32xf32>
    %182 = tpu.matmul %181, %180, %cst_97 {dimension_numbers = #tpu.dot_dimension_numbers<[1], [0], [0], [1], [0, 0, 1, 1], [], []>} : vector<2x16xf32>, vector<16x32xf32>, vector<2x32xf32> -> vector<2x32xf32>
    %c0_98 = arith.constant 0 : index
    %c0_99 = arith.constant 0 : index
    %183 = vector.load %arg15[%c0_98, %c0_99] : memref<32x32xf32, #tpu.memory_space<vmem>>, vector<32x32xf32>
    %cst_100 = arith.constant dense<0.000000e+00> : vector<2x32xf32>
    %184 = tpu.matmul %182, %183, %cst_100 {dimension_numbers = #tpu.dot_dimension_numbers<[1], [0], [0], [1], [0, 0, 1, 1], [], []>} : vector<2x32xf32>, vector<32x32xf32>, vector<2x32xf32> -> vector<2x32xf32>
    %c0_101 = arith.constant 0 : index
    %c0_102 = arith.constant 0 : index
    %185 = vector.load %arg16[%c0_101, %c0_102] : memref<1x32xf32, #tpu.memory_space<vmem>>, vector<1x32xf32>
    %186 = vector.broadcast %185 : vector<1x32xf32> to vector<2x32xf32>
    %187 = arith.addf %184, %186 : vector<2x32xf32>
    %cst_103 = arith.constant 0.000000e+00 : f32
    %188 = vector.broadcast %cst_103 : f32 to vector<2x32xf32>
    %189 = arith.subf %188, %187 : vector<2x32xf32>
    %190 = math.exp %189 : vector<2x32xf32>
    %cst_104 = arith.constant 1.000000e+00 : f32
    %191 = vector.broadcast %cst_104 : f32 to vector<2x32xf32>
    %192 = arith.addf %191, %190 : vector<2x32xf32>
    %cst_105 = arith.constant 1.000000e+00 : f32
    %193 = vector.broadcast %cst_105 : f32 to vector<2x32xf32>
    %194 = arith.divf %193, %192 : vector<2x32xf32>
    %195 = arith.mulf %187, %194 : vector<2x32xf32>
    %c0_106 = arith.constant 0 : index
    %c0_107 = arith.constant 0 : index
    %196 = vector.load %arg17[%c0_106, %c0_107] : memref<32x16xf32, #tpu.memory_space<vmem>>, vector<32x16xf32>
    %cst_108 = arith.constant dense<0.000000e+00> : vector<2x16xf32>
    %197 = tpu.matmul %195, %196, %cst_108 {dimension_numbers = #tpu.dot_dimension_numbers<[1], [0], [0], [1], [0, 0, 1, 1], [], []>} : vector<2x32xf32>, vector<32x16xf32>, vector<2x16xf32> -> vector<2x16xf32>
    %c0_109 = arith.constant 0 : index
    %c0_110 = arith.constant 0 : index
    %198 = vector.load %arg18[%c0_109, %c0_110] : memref<1x16xf32, #tpu.memory_space<vmem>>, vector<1x16xf32>
    %199 = vector.broadcast %198 : vector<1x16xf32> to vector<2x16xf32>
    %200 = arith.addf %197, %199 : vector<2x16xf32>
    %cst_111 = arith.constant 0.000000e+00 : f32
    %201 = vector.broadcast %cst_111 : f32 to vector<2x16xf32>
    %202 = arith.subf %201, %200 : vector<2x16xf32>
    %203 = math.exp %202 : vector<2x16xf32>
    %cst_112 = arith.constant 1.000000e+00 : f32
    %204 = vector.broadcast %cst_112 : f32 to vector<2x16xf32>
    %205 = arith.addf %204, %203 : vector<2x16xf32>
    %cst_113 = arith.constant 1.000000e+00 : f32
    %206 = vector.broadcast %cst_113 : f32 to vector<2x16xf32>
    %207 = arith.divf %206, %205 : vector<2x16xf32>
    %208 = arith.mulf %200, %207 : vector<2x16xf32>
    %c0_114 = arith.constant 0 : index
    %c0_115 = arith.constant 0 : index
    %209 = vector.load %arg19[%c0_114, %c0_115] : memref<16x1xf32, #tpu.memory_space<vmem>>, vector<16x1xf32>
    %cst_116 = arith.constant dense<0.000000e+00> : vector<2x1xf32>
    %210 = tpu.matmul %208, %209, %cst_116 {dimension_numbers = #tpu.dot_dimension_numbers<[1], [0], [0], [1], [0, 0, 1, 1], [], []>} : vector<2x16xf32>, vector<16x1xf32>, vector<2x1xf32> -> vector<2x1xf32>
    %c0_117 = arith.constant 0 : index
    %c0_118 = arith.constant 0 : index
    %211 = vector.load %arg20[%c0_117, %c0_118] : memref<1x1xf32, #tpu.memory_space<vmem>>, vector<1x1xf32>
    %212 = vector.broadcast %211 : vector<1x1xf32> to vector<2x1xf32>
    %213 = arith.addf %210, %212 : vector<2x1xf32>
    %c0_119 = arith.constant 0 : index
    %c0_120 = arith.constant 0 : index
    %214 = vector.load %arg21[%c0_119, %c0_120] : memref<2x1xf32, #tpu.memory_space<vmem>>, vector<2x1xf32>
    tpu.vector_store %arg21[%c0_119, %c0_120], %213 {strides = array<i32>} : memref<2x1xf32, #tpu.memory_space<vmem>>, vector<2x1xf32>,
    return
  }
}

</mosaic_0001>

<bundles_post_ra>
// kernel: tpu_custom_call.1
= control target key start
LH: loop header
LB: loop body
LE: loop exit
PB: predicated region body
PF: predicated region fallthrough
CT: control target
= control target key end

     0   :  { %vm161_vm0 = vcmask 130048   ;;  %vm258_vm1 = vcmask 1043456   ;;  %vm242_vm2 = vcmask 97280   ;;  %v1912_v23 = vmov 0   ;;  %s1913_s27 = smov 64   ;;  %s1915_s28 = smov 96   ;;  %s2668_s6 = inlined_call_operand.vmem [shape: f32[16,32], index: 6, kind: input, shape index: {}]   ;;  %s2669_s0 = inlined_call_operand.vmem [shape: f32[16,16], index: 0, kind: input, shape index: {}]   ;;  %s2670_s7 = inlined_call_operand.vmem [shape: f32[1,32], index: 7, kind: input, shape index: {}]   ;;  %s2671_s10 = inlined_call_operand.vmem [shape: f32[2,32,128], index: 10, kind: input, shape index: {}]   ;;  %s2672_s8 = inlined_call_operand.vmem [shape: f32[2,12,32], index: 8, kind: input, shape index: {}]   ;;  %s2673_s1 = inlined_call_operand.vmem [shape: f32[40,12], index: 1, kind: input, shape index: {}]   ;;  %s2674_s2 = inlined_call_operand.vmem [shape: s32[40,1], index: 2, kind: input, shape index: {}]   ;;  %s2675_s9 = inlined_call_operand.vmem [shape: f32[2,1,32], index: 9, kind: input, shape index: {}]   ;;  %s2676_s3 = inlined_call_operand.vmem [shape: s32[40,1], index: 3, kind: input, shape index: {}]   ;;  %s2677_s11 = inlined_call_operand.vmem [shape: f32[2,32,64], index: 11, kind: input, shape index: {}]   ;;  %s2678_s12 = inlined_call_operand.vmem [shape: f32[2,1,64], index: 12, kind: input, shape index: {}]   ;;  %s2679_s4 = inlined_call_operand.vmem [shape: s32[1,40], index: 4, kind: input, shape index: {}]   ;;  %s2680_s13 = inlined_call_operand.vmem [shape: f32[2,1,32], index: 13, kind: input, shape index: {}]   ;;  %s2681_s14 = inlined_call_operand.vmem [shape: f32[2,1,32], index: 14, kind: input, shape index: {}]   ;;  %s2682_s15 = inlined_call_operand.vmem [shape: f32[32,32], index: 15, kind: input, shape index: {}]   ;;  %s2683_s5 = inlined_call_operand.vmem [shape: f32[2,16], index: 5, kind: input, shape index: {}]   ;;  %s2684_s16 = inlined_call_operand.vmem [shape: f32[1,32], index: 16, kind: input, shape index: {}]   ;;  %s2685_s18 = inlined_call_operand.vmem [shape: f32[1,16], index: 18, kind: input, shape index: {}]   ;;  %s2686_s17 = inlined_call_operand.vmem [shape: f32[32,16], index: 17, kind: input, shape index: {}]   ;;  %s2687_s19 = inlined_call_operand.vmem [shape: f32[16,1], index: 19, kind: input, shape index: {}]   ;;  %s2688_s20 = inlined_call_operand.<no memory space> [shape: f32[1,1], index: 20, kind: input, shape index: {}]   ;;  %s2689_s21 = inlined_call_operand.vmem [shape: f32[2,1], index: 21, kind: output, shape index: {}]  }
   0x1   :  { %2695 = sst [smem:[#allocation3_spill]] %s2668_s6  ;;  %v72_v22 = vld [vmem:[%s2674_s2] sm:$0xff]  ;;  %1735 = vset.pattern.permute.xlu1 %v1912_v23  ;;  %1734 = vset.pattern.permute.xlu0 %v1912_v23  ;;  %vm398_vm7 = vcmask 261120   ;;  %v108_v52 = vld [vmem:[%s2676_s3 + $0x8] sm:$0xff]  ;;  %v74_v53 = vld [vmem:[%s2674_s2 + $0x10] sm:$0xff] }
   0x2   :  { %2696 = sst [smem:[#allocation4_spill]] %s2669_s0  ;;  %78 = vperm.xlu1 %1735, %v72_v22   ;;  %1736 = vset.pattern.permute.xlu2 %v1912_v23  ;;  %v111_v54 = vld [vmem:[%s2676_s3 + $0x20] sm:$0xff]  ;;  %v73_v55 = vld [vmem:[%s2674_s2 + $0x8] sm:$0xff]  ;;  %v109_v56 = vld [vmem:[%s2676_s3 + $0x10] sm:$0xff] }
   0x3   :  { %2697 = sst [smem:[#allocation5_spill]] %s2670_s7  ;;  %81 = vperm.xlu2 %1736, %v73_v55   ;;  %v2115_v58 = vld [vmem:[%s2675_s9] ss:$0 sm:$0xff]  ;;  %v110_v62 = vld [vmem:[%s2676_s3 + $0x18] sm:$0xff] }
   0x4   :  { %2698 = sst [smem:[#allocation6_spill]] %s2671_s10 }
   0x5   :  { %2699 = sst [smem:[#allocation7_spill]] %s2672_s8 }
   0x6   :  { %2700 = sst [smem:[#allocation8_spill]] %s2673_s1 }
   0x7   :  { %s2701_s26 = sld [smem:[#allocation3_spill]] }
   0x8   :  { %s2702_s6 = sld [smem:[#allocation4_spill]] }
   0x9   :  { %s2703_s23 = sld [smem:[#allocation6_spill]] }
   0xa   :  { %s2704_s7 = sld [smem:[#allocation5_spill]]  ;;  %116 = vperm.xlu1 %1735, %v108_v52  }
   0xb   :  { %s2705_s30 = sld [smem:[#allocation7_spill]]  ;;  %119 = vperm.xlu2 %1736, %v109_v56  }
   0xd   :  { %v156_v0 = vld [vmem:[%s2701_s26 + $0x8] sm:$0xff]  ;;  %v155_v1 = vld [vmem:[%s2701_s26] sm:$0xff] }
   0xe   :  { %182 = vmatpush.msra.mxu0 %v156_v0  ;;  %v153_v2 = vld [vmem:[%s2702_s6] sm:$0xff]  ;;  %v154_v3 = vld [vmem:[%s2702_s6 + $0x8] sm:$0xff] }
   0xf   :  { %v397_v4 = vld [vmem:[%s2703_s23 + $0x18] sm:$0xff]  ;;  %v396_v6 = vld [vmem:[%s2703_s23 + $0x10] sm:$0xff]  ;;  %v395_v7 = vld [vmem:[%s2703_s23 + $0x8] sm:$0xff] }
  0x10   :  { %183 = vmatpush.msra.mxu0 %v155_v1  ;;  %417 = vmatpush.msra.mxu2 %v397_v4  ;;  %v1742_v5 = vld [vmem:[%s2704_s7] ss:$0 sm:$0xff]  ;;  %s2706_s7 = sld [smem:[#allocation8_spill]] }
  0x11   :  { %1655 = vmatmul.msk.f32.vlgmr.msra.gmra.mxu0 %vm161_vm0, %v153_v2  ;;  %v394_v10 = vld [vmem:[%s2703_s23] sm:$0xff]  ;;  %v237_v16 = vld [vmem:[%s2705_s30 + $0x8] sm:$0xf] }
  0x12   :  { %418 = vmatpush.msra.mxu2 %v396_v6  ;;  %v236_v17 = vld [vmem:[%s2705_s30] sm:$0xff]  ;;  %1657 = vmatpush.msk.msra.mxu1 %vm258_vm1, %v237_v16 }
  0x13   :  { %84 = vperm.xlu1 %1735, %v74_v53   ;;  %122 = vperm.xlu2 %1736, %v110_v62   ;;  %v76_v6 = vld [vmem:[%s2674_s2 + $0x20] sm:$0xff] }
  0x14   :  { %419 = vmatpush.msra.mxu2 %v395_v7  ;;  %277 = vmatpush.msra.mxu1 %v236_v17 }
  0x16   :  { %420 = vmatpush.msra.mxu2 %v394_v10  ;;  %v231_v18 = vld [vmem:[%s2706_s7] sm:$0xff]  ;;  %v232_v24 = vld [vmem:[%s2706_s7 + $0x8] sm:$0xff]  ;;  %v233_v33 = vld [vmem:[%s2706_s7 + $0x10] sm:$0xff] }
  0x17   :  { %1658 = vmatmul.msk.f32.vlgmr.msra.gmra.mxu1 %vm242_vm2, %v231_v18  ;;  %v234_v45 = vld [vmem:[%s2706_s7 + $0x18] sm:$0xff]  ;;  %v235_v51 = vld [vmem:[%s2706_s7 + $0x20] sm:$0xff] }
  0x19   :  { %1656 = vmatmul.msk.f32.gmra.mxu0 %vm161_vm0, %v154_v3 }
  0x1b   :  { %125 = vperm.xlu1 %1735, %v111_v54   ;;  %90 = vperm.xlu2 %1736, %v76_v6  }
  0x1f   :  { %1659 = vmatmul.msk.f32.gmra.mxu1 %vm242_vm2, %v232_v24 }
  0x27   :  { %1660 = vmatmul.msk.f32.gmra.mxu1 %vm242_vm2, %v233_v33 }
  0x2f   :  { %1661 = vmatmul.msk.f32.gmra.mxu1 %vm242_vm2, %v234_v45  ;;  %v530_v45 = vld [vmem:[%s2677_s11] sm:$0xff] }
  0x37   :  { %1662 = vmatmul.msk.f32.gmra.mxu1 %vm242_vm2, %v235_v51 }
  0x74   :  { %v79_v55 = vpop.permute.xlu1 %78 }
  0x8e   :  { %v185_v8 = vpop.f32.mrf.mxu0 }
  0x8f   :  { %v186_v9 = vadd.f32 %v1742_v5, %v185_v8 }
  0x91   :  { %v191_v11 = vsub.f32 0.0, %v186_v9 }
  0x93   :  { %v193_v12 = vmul.f32 1.442695, %v191_v11 }
  0x94   :  { %v279_v57 = vpop.f32.mrf.mxu1 }
  0x95   :  { %1755 = vpow2.f32 %v193_v12  ;;  %v2118_v59 = vadd.f32 %v2115_v58, %v279_v57 }
  0x96   :  { %v188_v13 = vpop.f32.mrf.mxu0 }
  0x97   :  { %v2055_v14 = vadd.f32 %v1742_v5, %v188_v13  ;;  %v294_v61 = vsub.f32 0.0, %v2118_v59  ;;  %v107_v13 = vld [vmem:[%s2676_s3] sm:$0xff] }
  0x99   :  { %v192_v15 = vsub.f32 0.0, %v2055_v14  ;;  %v299_v63 = vmul.f32 1.442695, %v294_v61  ;;  %v1914_v61 = vmov 0.0  }
  0x9b   :  { %v1756_v19 = vpop.eup %1755  ;;  %v195_v20 = vmul.f32 1.442695, %v192_v15 }
  0x9c   :  { %v197_v21 = vadd.f32 1.0, %v1756_v19  ;;  %v282_v0 = vpop.f32.mrf.mxu1 }
  0x9d   :  { %1757 = vpow2.f32 %v195_v20  ;;  %v2125_v1 = vadd.f32 %v2115_v58, %v282_v0  ;;  %v533_v20 = vld [vmem:[%s2677_s11 + $0x18] sm:$0xff] }
  0x9e   :  { %1759 = vrcp.f32 %v197_v21  ;;  %v210_v30 = vand.u32 2147483648, %v197_v21  ;;  %v208_v32 = vand.u32 2147483647, %v197_v21  ;;  %vm204_vm4 = vweird.f32 %v197_v21  ;;  %561 = vmatpush.msrb.mxu2 %v533_v20 }
  0x9f   :  { %v295_v2 = vsub.f32 0.0, %v2125_v1 }
  0xa0   :  { %v211_v36 = vor.u32 1.1754944e-38, %v210_v30  ;;  %vm209_vm6 = vcmp.eq.f32.partialorder %v208_v32, 8.507059e+37 }
  0xa1   :  { %v301_v4 = vmul.f32 1.442695, %v295_v2 }
  0xa3   :  { %v1758_v25 = vpop.eup %1757 }
  0xa4   :  { %v1760_v26 = vpop.eup %1759  ;;  %v198_v27 = vadd.f32 1.0, %v1758_v25 }
  0xa5   :  { %v200_v28 = vmul.f32 %v1760_v26, %v197_v21  ;;  %vm205_vm3 = vweird.f32 %v1760_v26  ;;  %v532_v21 = vld [vmem:[%s2677_s11 + $0x10] sm:$0xff] }
  0xa6   :  { %1761 = vrcp.f32 %v198_v27  ;;  %vm206_vm5 = vmor %vm204_vm4, %vm205_vm3  ;;  %v225_v42 = vand.u32 2147483648, %v198_v27  ;;  %v223_v44 = vand.u32 2147483647, %v198_v27  ;;  %vm219_vm9 = vweird.f32 %v198_v27  ;;  %562 = vmatpush.msrb.mxu2 %v532_v21 }
  0xa7   :  { %v201_v29 = vsub.f32 1.0, %v200_v28  ;;  %1763 = vpow2.f32 %v299_v63 }
  0xa8   :  { %v226_v47 = vor.u32 1.1754944e-38, %v225_v42  ;;  %vm224_vm11 = vcmp.eq.f32.partialorder %v223_v44, 8.507059e+37  ;;  %1765 = vpow2.f32 %v301_v4  ;;  %v531_v44 = vld [vmem:[%s2677_s11 + $0x8] sm:$0xff] }
  0xa9   :  { %v202_v31 = vmul.f32 %v1760_v26, %v201_v29  ;;  %563 = vmatpush.msrb.mxu2 %v531_v44 }
  0xab   :  { %v203_v34 = vadd.f32 %v1760_v26, %v202_v31  ;;  %564 = vmatpush.msrb.mxu2 %v530_v45 }
  0xac   :  { %v1762_v35 = vpop.eup %1761 }
  0xad   :  { %v207_v37 = vsel %vm206_vm5, %v1760_v26, %v203_v34  ;;  %v215_v38 = vmul.f32 %v1762_v35, %v198_v27  ;;  %vm220_vm8 = vweird.f32 %v1762_v35  ;;  %v1764_v7 = vpop.eup %1763  ;;  %v75_v27 = vld [vmem:[%s2674_s2 + $0x18] sm:$0xff] }
  0xae   :  { %v212_v39 = vsel %vm209_vm6, %v211_v36, %v207_v37  ;;  %vm221_vm10 = vmor %vm219_vm9, %vm220_vm8  ;;  %v309_v8 = vadd.f32 1.0, %v1764_v7  ;;  %v1766_v12 = vpop.eup %1765 }
  0xaf   :  { %v2080_v40 = vmul.f32 %v212_v39, %v186_v9  ;;  %v216_v41 = vsub.f32 1.0, %v215_v38  ;;  %v285_v9 = vpop.f32.mrf.mxu1  ;;  %v310_v15 = vadd.f32 1.0, %v1766_v12 }
  0xb0   :  { %v2133_v10 = vadd.f32 %v2115_v58, %v285_v9  ;;  %1767 = vrcp.f32 %v309_v8  ;;  %v323_v22 = vand.u32 2147483647, %v309_v8  ;;  %v325_v23 = vand.u32 2147483648, %v309_v8 }
  0xb1   :  { %v217_v43 = vmul.f32 %v1762_v35, %v216_v41  ;;  %1663 = vmatmul.msk.f32.vlgmr.msra.gmra.mxu2 %vm398_vm7, %v2080_v40  ;;  %vm319_vm12 = vweird.f32 %v309_v8  ;;  %vm334_vm3 = vweird.f32 %v310_v15  ;;  %v338_v37 = vand.u32 2147483647, %v310_v15 }
  0xb2   :  { %v296_v11 = vsub.f32 0.0, %v2133_v10  ;;  %vm2156_vm15 = vcmp.eq.f32.partialorder %v323_v22, 8.507059e+37  ;;  %v326_v33 = vor.u32 1.1754944e-38, %v325_v23  ;;  %v340_v38 = vand.u32 2147483648, %v310_v15 }
  0xb3   :  { %v218_v46 = vadd.f32 %v1762_v35, %v217_v43  ;;  %vm339_vm6 = vcmp.eq.f32.partialorder %v338_v37, 8.507059e+37  ;;  %v82_v37 = vpop.permute.xlu2 %81 }
  0xb4   :  { %v341_v54 = vor.u32 1.1754944e-38, %v340_v38  ;;  %v117_v38 = vpop.permute.xlu1 %116 }
  0xb5   :  { %v222_v48 = vsel %vm221_vm10, %v1762_v35, %v218_v46  ;;  %v70_v46 = vlaneseq }
  0xb6   :  { %v227_v49 = vsel %vm224_vm11, %v226_v47, %v222_v48  ;;  %v1768_v16 = vpop.eup %1767 }
  0xb7   :  { %v2089_v50 = vmul.f32 %v227_v49, %v2055_v14  ;;  %v303_v14 = vmul.f32 1.442695, %v296_v11  ;;  %v288_v17 = vpop.f32.mrf.mxu1  ;;  %v315_v18 = vmul.f32 %v1768_v16, %v309_v8  ;;  %vm320_vm13 = vweird.f32 %v1768_v16 }
  0xb8   :  { %v2140_v19 = vadd.f32 %v2115_v58, %v288_v17  ;;  %vm2152_vm14 = vmor %vm319_vm12, %vm320_vm13  ;;  %v2176_v52 = vand.u32 127, %v70_v46 }
  0xb9   :  { %1664 = vmatmul.msk.f32.gmra.mxu2 %vm398_vm7, %v2089_v50  ;;  %1769 = vpow2.f32 %v303_v14  ;;  %v316_v24 = vsub.f32 1.0, %v315_v18 }
  0xba   :  { %1771 = vrcp.f32 %v310_v15  ;;  %v297_v25 = vsub.f32 0.0, %v2140_v19  ;;  %vm92_vm8 = vcmp.eq.s32.totalorder %v2176_v52, %v79_v55 }
  0xbb   :  { %v317_v28 = vmul.f32 %v1768_v16, %v316_v24  ;;  %v2187_v62 = vsel %vm92_vm8, 1.0, %v1914_v61 }
  0xbc   :  { %v305_v29 = vmul.f32 1.442695, %v297_v25 }
  0xbd   :  { %v318_v35 = vadd.f32 %v1768_v16, %v317_v28 }
  0xbe   :  { %1773 = vpow2.f32 %v305_v29 }
  0xbf   :  { %v1770_v26 = vpop.eup %1769  ;;  %v291_v39 = vpop.f32.mrf.mxu1  ;;  %v322_v41 = vsel %vm2152_vm14, %v1768_v16, %v318_v35 }
  0xc0   :  { %v1772_v30 = vpop.eup %1771  ;;  %v311_v34 = vadd.f32 1.0, %v1770_v26  ;;  %v2163_v43 = vadd.f32 %v2115_v58, %v291_v39  ;;  %v327_v47 = vsel %vm2156_vm15, %v326_v33, %v322_v41  ;;  %v85_v39 = vpop.permute.xlu1 %84 }
  0xc1   :  { %v330_v36 = vmul.f32 %v1772_v30, %v310_v15  ;;  %vm335_vm4 = vweird.f32 %v1772_v30  ;;  %v389_v48 = vmul.f32 %v327_v47, %v2118_v59 }
  0xc2   :  { %1775 = vrcp.f32 %v311_v34  ;;  %v298_v51 = vsub.f32 0.0, %v2163_v43  ;;  %vm2180_vm5 = vmor %vm334_vm3, %vm335_vm4  ;;  %vm349_vm9 = vweird.f32 %v311_v34  ;;  %v353_v6 = vand.u32 2147483647, %v311_v34 }
  0xc3   :  { %v331_v42 = vsub.f32 1.0, %v330_v36  ;;  %1675 = vmatmul.msk.f32.vlgmr.msrb.gmra.mxu2 %vm398_vm7, %v389_v48 }
  0xc4   :  { %v1774_v56 = vpop.eup %1773  ;;  %v307_v58 = vmul.f32 1.442695, %v298_v51  ;;  %vm354_vm12 = vcmp.eq.f32.partialorder %v353_v6, 8.507059e+37 }
  0xc5   :  { %v332_v49 = vmul.f32 %v1772_v30, %v331_v42  ;;  %v120_v42 = vpop.permute.xlu2 %119 }
  0xc6   :  { %1777 = vpow2.f32 %v307_v58 }
  0xc7   :  { %v333_v57 = vadd.f32 %v1772_v30, %v332_v49 }
  0xc8   :  { %v1776_v59 = vpop.eup %1775 }
  0xc9   :  { %v337_v63 = vsel %vm2180_vm5, %v1772_v30, %v333_v57  ;;  %v345_v0 = vmul.f32 %v1776_v59, %v311_v34  ;;  %vm350_vm10 = vweird.f32 %v1776_v59 }
  0xca   :  { %v342_v2 = vsel %vm339_vm6, %v341_v54, %v337_v63  ;;  %vm351_vm11 = vmor %vm349_vm9, %vm350_vm10  ;;  %vm93_vm9 = vcmp.eq.s32.totalorder %v2176_v52, %v82_v37  ;;  %vm94_vm10 = vcmp.eq.s32.totalorder %v2176_v52, %v85_v39 }
  0xcb   :  { %v390_v4 = vmul.f32 %v342_v2, %v2125_v1  ;;  %v2209_v41 = vsel %vm94_vm10, 1.0, %v1914_v61 }
  0xcc   :  { %v1778_v9 = vpop.eup %1777 }
  0xcd   :  { %1676 = vmatmul.msk.f32.gmra.mxu2 %vm398_vm7, %v390_v4  ;;  %v123_v48 = vpop.permute.xlu2 %122 }
  0xd5   :  { %v91_v55 = vpop.permute.xlu2 %90 }
 0x134   :  { %v422_v60 = vpop.f32.mrf.mxu2 }
 0x13c   :  { %v425_v3 = vpop.f32.mrf.mxu2 }
 0x13d   :  { %512 = vmatpush.msrb.mxu0 %v425_v3  ;;  %v1729_v5 = vpack.i.bf16 %v422_v60, %v425_v3  ;;  %v355_v3 = vand.u32 2147483648, %v311_v34 }
 0x13f   :  { %1730 = vrot.lane.b32.xlu0 %v1729_v5, %s1913_s27  ;;  %513 = vmatpush.msrb.mxu0 %v422_v60  ;;  %v312_v60 = vadd.f32 1.0, %v1774_v56  ;;  %v346_v5 = vsub.f32 1.0, %v345_v0  ;;  %v356_v8 = vor.u32 1.1754944e-38, %v355_v3 }
 0x140   :  { %1670 = vmatmul.msk.f32.vlgmr.msrb.gmra.mxu0 %vm161_vm0, %v2187_v62 }
 0x141   :  { %1779 = vrcp.f32 %v312_v60  ;;  %v347_v7 = vmul.f32 %v1776_v59, %v346_v5  ;;  %vm364_vm13 = vweird.f32 %v312_v60  ;;  %v370_v17 = vand.u32 2147483648, %v312_v60 }
 0x142   :  { %v368_v20 = vand.u32 2147483647, %v312_v60 }
 0x143   :  { %v348_v11 = vadd.f32 %v1776_v59, %v347_v7  ;;  %v371_v22 = vor.u32 1.1754944e-38, %v370_v17 }
 0x144   :  { %vm369_vm3 = vcmp.eq.f32.partialorder %v368_v20, 8.507059e+37 }
 0x145   :  { %v352_v14 = vsel %vm351_vm11, %v1776_v59, %v348_v11  ;;  %v126_v59 = vpop.permute.xlu1 %125 }
 0x146   :  { %v357_v16 = vsel %vm354_vm12, %v356_v8, %v352_v14  ;;  %vm128_vm12 = vcmp.eq.s32.totalorder %v2176_v52, %v117_v38  ;;  %v566_v0 = vpop.f32.mrf.mxu2  ;;  %v1744_v8 = vld [vmem:[%s2678_s12] ss:$0 sm:$0xff] }
 0x147   :  { %113 = vperm.xlu0 %1734, %v107_v13   ;;  %v1780_v12 = vpop.eup %1779  ;;  %v313_v13 = vadd.f32 1.0, %v1778_v9  ;;  %v391_v1 = vmul.f32 %v357_v16, %v2133_v10  ;;  %v2222_v53 = vsel %vm128_vm12, 1.0, %v1914_v61 }
 0x148   :  { %v360_v15 = vmul.f32 %v1780_v12, %v312_v60  ;;  %vm365_vm14 = vweird.f32 %v1780_v12 }
 0x149   :  { %1781 = vrcp.f32 %v313_v13  ;;  %vm366_vm15 = vmor %vm364_vm13, %vm365_vm14  ;;  %1677 = vmatmul.msk.f32.gmra.mxu2 %vm398_vm7, %v391_v1  ;;  %vm379_vm4 = vweird.f32 %v313_v13  ;;  %v385_v28 = vand.u32 2147483648, %v313_v13  ;;  %v383_v10 = vand.u32 2147483647, %v313_v13 }
 0x14a   :  { %v361_v18 = vsub.f32 1.0, %v360_v15  ;;  %vm129_vm14 = vcmp.eq.s32.totalorder %v2176_v52, %v120_v42 }
 0x14b   :  { %v386_v32 = vor.u32 1.1754944e-38, %v385_v28  ;;  %vm384_vm8 = vcmp.eq.f32.partialorder %v383_v10, 8.507059e+37  ;;  %v2234_v56 = vsel %vm129_vm14, 1.0, %v1914_v61 }
 0x14c   :  { %v362_v21 = vmul.f32 %v1780_v12, %v361_v18 }
 0x14e   :  { %v363_v23 = vadd.f32 %v1780_v12, %v362_v21 }
 0x14f   :  { %87 = vperm.xlu0 %1734, %v75_v27   ;;  %v1782_v24 = vpop.eup %1781 }
 0x150   :  { %v367_v25 = vsel %vm366_vm15, %v1780_v12, %v363_v23  ;;  %v375_v26 = vmul.f32 %v1782_v24, %v313_v13  ;;  %vm380_vm5 = vweird.f32 %v1782_v24  ;;  %vm96_vm15 = vcmp.eq.s32.totalorder %v2176_v52, %v91_v55  ;;  %v569_v4 = vpop.f32.mrf.mxu2 }
 0x151   :  { %v372_v27 = vsel %vm369_vm3, %v371_v22, %v367_v25  ;;  %vm381_vm6 = vmor %vm379_vm4, %vm380_vm5  ;;  %v2237_v57 = vsel %vm96_vm15, 1.0, %v1914_v61  ;;  %vm130_vm3 = vcmp.eq.s32.totalorder %v2176_v52, %v123_v48  ;;  %vm131_vm4 = vcmp.eq.s32.totalorder %v2176_v52, %v126_v59 }
 0x152   :  { %v392_v29 = vmul.f32 %v372_v27, %v2140_v19  ;;  %v376_v30 = vsub.f32 1.0, %v375_v26  ;;  %v2203_v19 = vsel %vm93_vm9, 1.0, %v1914_v61  ;;  %v2245_v58 = vsel %vm130_vm3, 1.0, %v1914_v61 }
 0x153   :  { %1671 = vmatmul.msk.f32.gmra.mxu0 %vm161_vm0, %v2203_v19  ;;  %v2251_v60 = vsel %vm131_vm4, 1.0, %v1914_v61 }
 0x154   :  { %v377_v31 = vmul.f32 %v1782_v24, %v376_v30  ;;  %1678 = vmatmul.msk.f32.gmra.mxu2 %vm398_vm7, %v392_v29 }
 0x156   :  { %v378_v33 = vadd.f32 %v1782_v24, %v377_v31 }
 0x158   :  { %v382_v34 = vsel %vm381_vm6, %v1782_v24, %v378_v33 }
 0x159   :  { %v387_v35 = vsel %vm384_vm8, %v386_v32, %v382_v34 }
 0x15a   :  { %v393_v36 = vmul.f32 %v387_v35, %v2163_v43 }
 0x15b   :  { %1672 = vmatmul.msk.f32.gmra.mxu0 %vm161_vm0, %v2209_v41 }
 0x15c   :  { %1679 = vmatmul.msk.f32.gmra.mxu2 %vm398_vm7, %v393_v36 }
 0x1b1   :  { %v1731_v43 = vpop.permute.xlu0 %1730 }
 0x1b2   :  { %v1732_v44 = vunpack.i.l.bf16 %v1731_v43  ;;  %v1733_v45 = vunpack.i.h.bf16 %v1731_v43 }
 0x1b4   :  { %465 = vmatpush.msra.mxu3 %v1732_v44 }
 0x1b6   :  { %466 = vmatpush.msra.mxu3 %v1733_v45 }
 0x1b9   :  { %v114_v47 = vpop.permute.xlu0 %113 }
 0x1ba   :  { %vm127_vm11 = vcmp.eq.s32.totalorder %v2176_v52, %v114_v47 }
 0x1bb   :  { %v2215_v49 = vsel %vm127_vm11, 1.0, %v1914_v61 }
 0x1bc   :  { %1665 = vmatmul.msk.f32.vlgmr.msra.gmra.mxu3 %vm161_vm0, %v2215_v49 }
 0x1bd   :  { %v515_v63 = vpop.f32.mrf.mxu0 }
 0x1c1   :  { %v88_v51 = vpop.permute.xlu0 %87 }
 0x1c2   :  { %vm95_vm13 = vcmp.eq.s32.totalorder %v2176_v52, %v88_v51 }
 0x1c3   :  { %v2225_v54 = vsel %vm95_vm13, 1.0, %v1914_v61 }
 0x1c4   :  { %1666 = vmatmul.msk.f32.gmra.mxu3 %vm161_vm0, %v2222_v53  ;;  %1673 = vmatmul.msk.f32.gmra.mxu0 %vm161_vm0, %v2225_v54 }
 0x1cc   :  { %1667 = vmatmul.msk.f32.gmra.mxu3 %vm161_vm0, %v2234_v56  ;;  %1674 = vmatmul.msk.f32.gmra.mxu0 %vm161_vm0, %v2237_v57  ;;  %v572_v52 = vpop.f32.mrf.mxu2 }
 0x1d0   :  { %v518_v3 = vpop.f32.mrf.mxu0 }
 0x1d4   :  { %1668 = vmatmul.msk.f32.gmra.mxu3 %vm161_vm0, %v2245_v58 }
 0x1d7   :  { %v575_v22 = vpop.f32.mrf.mxu2 }
 0x1d8   :  { %v521_v9 = vpop.f32.mrf.mxu0 }
 0x1dc   :  { %1669 = vmatmul.msk.f32.gmra.mxu3 %vm161_vm0, %v2251_v60 }
 0x1df   :  { %v578_v37 = vpop.f32.mrf.mxu2 }
 0x23f   :  { %v468_v2 = vpop.f32.mrf.mxu3 }
 0x240   :  { %v516_v5 = vadd.f32 %v515_v63, %v468_v2 }
 0x241   :  { %v524_v18 = vpop.f32.mrf.mxu0 }
 0x242   :  { %v581_v7 = vadd.f32 %v566_v0, %v516_v5 }
 0x244   :  { %v2258_v11 = vadd.f32 %v1744_v8, %v581_v7 }
 0x246   :  { %v695_v15 = vand.u32 2147483647, %v2258_v11  ;;  %vm770_vm13 = vcmp.gt.f32.partialorder %v2258_v11, 20.0 }
 0x247   :  { %v471_v6 = vpop.f32.mrf.mxu3 }
 0x248   :  { %v519_v12 = vadd.f32 %v518_v3, %v471_v6  ;;  %v700_v20 = vsub.f32 0.0, %v695_v15 }
 0x249   :  { %v527_v33 = vpop.f32.mrf.mxu0 }
 0x24a   :  { %v582_v17 = vadd.f32 %v569_v4, %v519_v12  ;;  %v705_v27 = vmul.f32 1.442695, %v700_v20 }
 0x24c   :  { %v2264_v23 = vadd.f32 %v1744_v8, %v582_v17 }
 0x24e   :  { %v696_v30 = vand.u32 2147483647, %v2264_v23  ;;  %vm771_vm15 = vcmp.gt.f32.partialorder %v2264_v23, 20.0 }
 0x24f   :  { %v474_v13 = vpop.f32.mrf.mxu3 }
 0x250   :  { %v522_v14 = vadd.f32 %v521_v9, %v474_v13  ;;  %v701_v32 = vsub.f32 0.0, %v696_v30 }
 0x252   :  { %v583_v16 = vadd.f32 %v572_v52, %v522_v14  ;;  %v707_v43 = vmul.f32 1.442695, %v701_v32 }
 0x254   :  { %v2261_v1 = vadd.f32 %v1744_v8, %v583_v16 }
 0x256   :  { %v697_v21 = vand.u32 2147483647, %v2261_v1  ;;  %v762_v52 = vmax.f32 %v2261_v1, 0.0  ;;  %vm772_vm6 = vcmp.gt.f32.partialorder %v2261_v1, 20.0 }
 0x257   :  { %v477_v24 = vpop.f32.mrf.mxu3 }
 0x258   :  { %v702_v25 = vsub.f32 0.0, %v697_v21  ;;  %v525_v26 = vadd.f32 %v524_v18, %v477_v24 }
 0x25a   :  { %v709_v28 = vmul.f32 1.442695, %v702_v25  ;;  %v584_v29 = vadd.f32 %v575_v22, %v525_v26 }
 0x25c   :  { %1783 = vpow2.f32 %v709_v28  ;;  %v2267_v10 = vadd.f32 %v1744_v8, %v584_v29 }
 0x25d   :  { %1785 = vpow2.f32 %v705_v27 }
 0x25e   :  { %v698_v31 = vand.u32 2147483647, %v2267_v10  ;;  %v763_v29 = vmax.f32 %v2267_v10, 0.0  ;;  %vm773_vm9 = vcmp.gt.f32.partialorder %v2267_v10, 20.0 }
 0x25f   :  { %v480_v34 = vpop.f32.mrf.mxu3 }
 0x260   :  { %v703_v35 = vsub.f32 0.0, %v698_v31  ;;  %v528_v36 = vadd.f32 %v527_v33, %v480_v34 }
 0x262   :  { %v1784_v38 = vpop.eup %1783  ;;  %v711_v39 = vmul.f32 1.442695, %v703_v35  ;;  %v585_v42 = vadd.f32 %v578_v37, %v528_v36 }
 0x263   :  { %v733_v44 = vadd.f32 1.0, %v1784_v38  ;;  %v1786_v45 = vpop.eup %1785  ;;  %v736_v48 = vmul.f32 -0.5, %v1784_v38  ;;  %v739_v0 = vand.u32 2147483647, %v1784_v38 }
 0x264   :  { %1787 = vpow2.f32 %v711_v39  ;;  %v2270_v47 = vadd.f32 %v1744_v8, %v585_v42  ;;  %v715_v55 = vadd.f32 1.0, %v1786_v45  ;;  %v718_v14 = vmul.f32 -0.5, %v1786_v45 }
 0x265   :  { %1789 = vlog2.f32 %v733_v44  ;;  %v737_v63 = vadd.f32 1.0, %v736_v48  ;;  %vm740_vm5 = vcmp.lt.f32.partialorder %v739_v0, 0.0004427343  ;;  %v721_v30 = vand.u32 2147483647, %v1786_v45 }
 0x266   :  { %v699_v51 = vand.u32 2147483647, %v2270_v47  ;;  %1791 = vpow2.f32 %v707_v43  ;;  %v719_v25 = vadd.f32 1.0, %v718_v14  ;;  %v760_v44 = vmax.f32 %v2258_v11, 0.0 }
 0x267   :  { %1793 = vlog2.f32 %v715_v55  ;;  %v738_v7 = vmul.f32 %v1784_v38, %v737_v63  ;;  %vm722_vm10 = vcmp.lt.f32.partialorder %v721_v30, 0.0004427343  ;;  %vm774_vm12 = vcmp.gt.f32.partialorder %v2270_v47, 20.0 }
 0x268   :  { %v704_v59 = vsub.f32 0.0, %v699_v51  ;;  %v720_v35 = vmul.f32 %v1786_v45, %v719_v25  ;;  %v597_v14 = vsub.f32 0.0, %v2261_v1 }
 0x26a   :  { %v1788_v2 = vpop.eup %1787  ;;  %v713_v3 = vmul.f32 1.442695, %v704_v59  ;;  %v764_v59 = vmax.f32 %v2270_v47, 0.0 }
 0x26b   :  { %v1790_v4 = vpop.eup %1789  ;;  %v742_v5 = vadd.f32 1.0, %v1788_v2  ;;  %v745_v9 = vmul.f32 -0.5, %v1788_v2  ;;  %v748_v20 = vand.u32 2147483647, %v1788_v2 }
 0x26c   :  { %1795 = vpow2.f32 %v713_v3  ;;  %v735_v6 = vmul.f32 0.6931472, %v1790_v4  ;;  %v1792_v8 = vpop.eup %1791 }
 0x26d   :  { %1797 = vlog2.f32 %v742_v5  ;;  %v746_v15 = vadd.f32 1.0, %v745_v9  ;;  %v724_v16 = vadd.f32 1.0, %v1792_v8  ;;  %v1794_v17 = vpop.eup %1793  ;;  %vm749_vm8 = vcmp.lt.f32.partialorder %v748_v20, 0.0004427343 }
 0x26e   :  { %v741_v12 = vsel %vm740_vm5, %v738_v7, %v735_v6  ;;  %v717_v32 = vmul.f32 0.6931472, %v1794_v17  ;;  %v727_v36 = vmul.f32 -0.5, %v1792_v8  ;;  %v730_v45 = vand.u32 2147483647, %v1792_v8 }
 0x26f   :  { %v767_v13 = vadd.f32 %v762_v52, %v741_v12  ;;  %v747_v27 = vmul.f32 %v1788_v2, %v746_v15  ;;  %1799 = vlog2.f32 %v724_v16  ;;  %v761_v9 = vmax.f32 %v2264_v23, 0.0 }
 0x270   :  { %v723_v42 = vsel %vm722_vm10, %v720_v35, %v717_v32  ;;  %v728_v55 = vadd.f32 1.0, %v727_v36  ;;  %vm731_vm14 = vcmp.lt.f32.partialorder %v730_v45, 0.0004427343  ;;  %v596_v17 = vsub.f32 0.0, %v2264_v23 }
 0x271   :  { %v777_v18 = vsel %vm772_vm6, %v2261_v1, %v767_v13  ;;  %v765_v63 = vadd.f32 %v760_v44, %v723_v42  ;;  %v598_v13 = vsub.f32 0.0, %v2267_v10  ;;  %v595_v20 = vsub.f32 0.0, %v2258_v11 }
 0x272   :  { %v1796_v21 = vpop.eup %1795  ;;  %789 = vrot.lane.b32.xlu2 %v777_v18, %s1915_s28  ;;  %v729_v4 = vmul.f32 %v1792_v8, %v728_v55  ;;  %v599_v8 = vsub.f32 0.0, %v2270_v47  ;;  %v604_v18 = vmul.f32 1.442695, %v597_v14 }
 0x273   :  { %v1798_v22 = vpop.eup %1797  ;;  %v751_v24 = vadd.f32 1.0, %v1796_v21  ;;  %v754_v28 = vmul.f32 -0.5, %v1796_v21  ;;  %v757_v38 = vand.u32 2147483647, %v1796_v21  ;;  %v775_v6 = vsel %vm770_vm13, %v2258_v11, %v765_v63 }
 0x274   :  { %v744_v26 = vmul.f32 0.6931472, %v1798_v22  ;;  %v608_v15 = vmul.f32 1.442695, %v599_v8  ;;  %v606_v16 = vmul.f32 1.442695, %v598_v13 }
 0x275   :  { %1801 = vlog2.f32 %v751_v24  ;;  %v755_v34 = vadd.f32 1.0, %v754_v28  ;;  %v1800_v39 = vpop.eup %1799  ;;  %vm758_vm11 = vcmp.lt.f32.partialorder %v757_v38, 0.0004427343  ;;  %v600_v22 = vmul.f32 1.442695, %v595_v20 }
 0x276   :  { %v750_v31 = vsel %vm749_vm8, %v747_v27, %v744_v26  ;;  %v726_v2 = vmul.f32 0.6931472, %v1800_v39  ;;  %1803 = vpow2.f32 %v608_v15 }
 0x277   :  { %v768_v33 = vadd.f32 %v763_v29, %v750_v31  ;;  %v756_v51 = vmul.f32 %v1796_v21, %v755_v34  ;;  %1805 = vpow2.f32 %v606_v16  ;;  %v602_v21 = vmul.f32 1.442695, %v596_v17 }
 0x278   :  { %v732_v7 = vsel %vm731_vm14, %v729_v4, %v726_v2  ;;  %1807 = vpow2.f32 %v604_v18 }
 0x279   :  { %v778_v37 = vsel %vm773_vm9, %v2267_v10, %v768_v33  ;;  %v766_v52 = vadd.f32 %v761_v9, %v732_v7  ;;  %1809 = vpow2.f32 %v602_v21 }
 0x27a   :  { %791 = vrot.lane.b32.xlu1 %v778_v37, %s1915_s28  ;;  %1811 = vpow2.f32 %v600_v22 }
 0x27b   :  { %v1802_v43 = vpop.eup %1801  ;;  %v776_v12 = vsel %vm771_vm15, %v2264_v23, %v766_v52  ;;  %v1693_v52 = vld [vmem:[%s2703_s23 + $0x30] sm:$0xff] }
 0x27c   :  { %v753_v48 = vmul.f32 0.6931472, %v1802_v43  ;;  %v1804_v24 = vpop.eup %1803 }
 0x27d   :  { %v1806_v25 = vpop.eup %1805  ;;  %v614_v26 = vadd.f32 1.0, %v1804_v24 }
 0x27e   :  { %v759_v0 = vsel %vm758_vm11, %v756_v51, %v753_v48  ;;  %v1808_v27 = vpop.eup %1807  ;;  %v613_v28 = vadd.f32 1.0, %v1806_v25 }
 0x27f   :  { %v769_v3 = vadd.f32 %v764_v59, %v759_v0  ;;  %v1810_v29 = vpop.eup %1809  ;;  %v2298_v30 = vadd.f32 1.0, %v1808_v27  ;;  %1813 = vrcp.f32 %v614_v26  ;;  %v686_v4 = vand.u32 2147483648, %v614_v26 }
 0x280   :  { %v1812_v31 = vpop.eup %1811  ;;  %1815 = vrcp.f32 %v613_v28  ;;  %v2300_v32 = vadd.f32 1.0, %v1810_v29  ;;  %vm680_vm5 = vweird.f32 %v614_v26  ;;  %v684_v7 = vand.u32 2147483647, %v614_v26 }
 0x281   :  { %v779_v5 = vsel %vm774_vm12, %v2270_v47, %v769_v3  ;;  %1817 = vrcp.f32 %v2298_v30  ;;  %v2303_v33 = vadd.f32 1.0, %v1812_v31  ;;  %v671_v9 = vand.u32 2147483648, %v613_v28 }
 0x282   :  { %793 = vrot.lane.b32.xlu0 %v779_v5, %s1915_s28  ;;  %785 = vrot.lane.b32.xlu1 %v775_v6, %s1915_s28  ;;  %1819 = vrcp.f32 %v2300_v32  ;;  %vm665_vm9 = vweird.f32 %v613_v28  ;;  %v669_v13 = vand.u32 2147483647, %v613_v28  ;;  %v656_v15 = vand.u32 2147483648, %v2298_v30 }
 0x283   :  { %1821 = vrcp.f32 %v2303_v33  ;;  %v687_v17 = vor.u32 1.1754944e-38, %v686_v4  ;;  %vm650_vm11 = vweird.f32 %v2298_v30  ;;  %v654_v20 = vand.u32 2147483647, %v2298_v30 }
 0x284   :  { %vm685_vm12 = vcmp.eq.f32.partialorder %v684_v7, 8.507059e+37  ;;  %v672_v24 = vor.u32 1.1754944e-38, %v671_v9  ;;  %vm670_vm15 = vcmp.eq.f32.partialorder %v669_v13, 8.507059e+37  ;;  %v641_v31 = vand.u32 2147483648, %v2300_v32  ;;  %v1747_v13 = vld [vmem:[%s2681_s14] ss:$0 sm:$0xff] }
 0x285   :  { %v1814_v34 = vpop.eup %1813 }
 0x286   :  { %v1816_v35 = vpop.eup %1815  ;;  %v676_v36 = vmul.f32 %v1814_v34, %v614_v26  ;;  %vm681_vm3 = vweird.f32 %v1814_v34 }
 0x287   :  { %v1818_v37 = vpop.eup %1817  ;;  %v661_v38 = vmul.f32 %v1816_v35, %v613_v28  ;;  %vm666_vm4 = vweird.f32 %v1816_v35  ;;  %vm2316_vm8 = vmor %vm680_vm5, %vm681_vm3  ;;  %v657_v28 = vor.u32 1.1754944e-38, %v656_v15  ;;  %vm655_vm5 = vcmp.eq.f32.partialorder %v654_v20, 8.507059e+37 }
 0x288   :  { %v2307_v39 = vpop.eup %1819  ;;  %v646_v42 = vmul.f32 %v1818_v37, %v2298_v30  ;;  %v677_v43 = vsub.f32 1.0, %v676_v36  ;;  %vm651_vm6 = vweird.f32 %v1818_v37  ;;  %vm2324_vm10 = vmor %vm665_vm9, %vm666_vm4  ;;  %vm635_vm4 = vweird.f32 %v2300_v32 }
 0x289   :  { %v2310_v44 = vpop.eup %1821  ;;  %v662_v48 = vsub.f32 1.0, %v661_v38  ;;  %v631_v51 = vmul.f32 %v2307_v39, %v2300_v32  ;;  %vm2334_vm13 = vmor %vm650_vm11, %vm651_vm6  ;;  %vm636_vm3 = vweird.f32 %v2307_v39  ;;  %v639_v36 = vand.u32 2147483647, %v2300_v32 }
 0x28a   :  { %787 = vrot.lane.b32.xlu0 %v776_v12, %s1915_s28  ;;  %v647_v55 = vsub.f32 1.0, %v646_v42  ;;  %v678_v59 = vmul.f32 %v1814_v34, %v677_v43  ;;  %v616_v63 = vmul.f32 %v2310_v44, %v2303_v33  ;;  %vm621_vm14 = vweird.f32 %v2310_v44 }
 0x28b   :  { %v663_v45 = vmul.f32 %v1816_v35, %v662_v48  ;;  %v632_v0 = vsub.f32 1.0, %v631_v51  ;;  %vm620_vm6 = vweird.f32 %v2303_v33  ;;  %v626_v42 = vand.u32 2147483648, %v2303_v33 }
 0x28c   :  { %v648_v2 = vmul.f32 %v1818_v37, %v647_v55  ;;  %v679_v3 = vadd.f32 %v1814_v34, %v678_v59  ;;  %v617_v5 = vsub.f32 1.0, %v616_v63  ;;  %v624_v51 = vand.u32 2147483647, %v2303_v33  ;;  %vm622_vm9 = vmor %vm620_vm6, %vm621_vm14  ;;  %v1745_v33 = vld [vmem:[%s2679_s4] ss:$0 sm:$0xff] }
 0x28d   :  { %v664_v6 = vadd.f32 %v1816_v35, %v663_v45  ;;  %v633_v12 = vmul.f32 %v2307_v39, %v632_v0  ;;  %v627_v0 = vor.u32 1.1754944e-38, %v626_v42 }
 0x28e   :  { %v649_v8 = vadd.f32 %v1818_v37, %v648_v2  ;;  %v683_v14 = vsel %vm2316_vm8, %v1814_v34, %v679_v3  ;;  %v618_v18 = vmul.f32 %v2310_v44, %v617_v5  ;;  %vm637_vm8 = vmor %vm635_vm4, %vm636_vm3  ;;  %vm625_vm11 = vcmp.eq.f32.partialorder %v624_v51, 8.507059e+37 }
 0x28f   :  { %v668_v21 = vsel %vm2324_vm10, %v1816_v35, %v664_v6  ;;  %v688_v25 = vsel %vm685_vm12, %v687_v17, %v683_v14  ;;  %v634_v27 = vadd.f32 %v2307_v39, %v633_v12  ;;  %vm640_vm10 = vcmp.eq.f32.partialorder %v639_v36, 8.507059e+37  ;;  %v1692_v12 = vld [vmem:[%s2703_s23 + $0x28] sm:$0xff] }
 0x290   :  { %v653_v26 = vsel %vm2334_vm13, %v1818_v37, %v649_v8  ;;  %v673_v30 = vsel %vm670_vm15, %v672_v24, %v668_v21  ;;  %v694_v34 = vmul.f32 %v688_v25, %v2270_v47  ;;  %v619_v35 = vadd.f32 %v2310_v44, %v618_v18  ;;  %v1746_v8 = vld [vmem:[%s2680_s13] ss:$0 sm:$0xff] }
 0x291   :  { %v658_v37 = vsel %vm655_vm5, %v657_v28, %v653_v26  ;;  %v693_v43 = vmul.f32 %v673_v30, %v2267_v10  ;;  %v638_v55 = vsel %vm637_vm8, %v2307_v39, %v634_v27  ;;  %v642_v47 = vor.u32 1.1754944e-38, %v641_v31  ;;  %v1683_v26 = vld [vmem:[%s2705_s30 + $0x18] sm:$0xf]  ;;  %v1682_v27 = vld [vmem:[%s2705_s30 + $0x10] sm:$0xff] }
 0x292   :  { %v692_v32 = vmul.f32 %v658_v37, %v2261_v1  ;;  %v623_v45 = vsel %vm622_vm9, %v2310_v44, %v619_v35  ;;  %v143_v10 = vshrl.u32 %v70_v46, 7  ;;  %vm805_vm13 = vcmask 326656   ;;  %1685 = vmatpush.msk.msrb.mxu3 %vm258_vm1, %v1683_v26  ;;  %v1908_v37 = vld [vmem:[%s2706_s7 + $0x8] sm:$0xff] }
 0x293   :  { %v643_v2 = vsel %vm640_vm10, %v642_v47, %v638_v55  ;;  %v628_v3 = vsel %vm625_vm11, %v627_v0, %v623_v45 }
 0x294   :  { %v691_v1 = vmul.f32 %v643_v2, %v2264_v23  ;;  %vm147_vm12 = vcmp.eq.s32.totalorder %v143_v10, %v1745_v33  ;;  %v690_v44 = vmul.f32 %v628_v3, %v2258_v11  ;;  %v144_v9 = vadd.s32 8, %v143_v10  ;;  %v1694_v11 = vld [vmem:[%s2703_s23 + $0x38] sm:$0xff]  ;;  %909 = vmatpush.msrb.mxu3 %v1682_v27 }
 0x295   :  { %v2364_v46 = vsel %vm147_vm12, 1.0, %v1914_v61  ;;  %1049 = vmatpush.msra.mxu0 %v1694_v11  ;;  %v2431_v11 = vld [vmem:[%s2675_s9 + $0x1] ss:$0 sm:$0xff] }
 0x296   :  { %vm148_vm14 = vcmp.eq.s32.totalorder %v144_v9, %v1745_v33 }
 0x297   :  { %v2369_v23 = vsel %vm148_vm14, 1.0, %v1914_v61  ;;  %1050 = vmatpush.msra.mxu0 %v1693_v52  ;;  %v1691_v61 = vld [vmem:[%s2703_s23 + $0x20] sm:$0xff] }
 0x299   :  { %1051 = vmatpush.msra.mxu0 %v1692_v12 }
 0x29b   :  { %1052 = vmatpush.msra.mxu0 %v1691_v61 }
 0x2cc   :  { %v790_v59 = vpop.permute.xlu2 %789 }
 0x2cd   :  { %v802_v39 = vmul.f32 %v790_v59, %v692_v32 }
 0x2ec   :  { %v792_v29 = vpop.permute.xlu1 %791 }
 0x2ed   :  { %v803_v63 = vmul.f32 %v792_v29, %v693_v43  ;;  %v1907_v29 = vld [vmem:[%s2706_s7] sm:$0xff] }
 0x2ee   :  { %1686 = vmatmul.msk.f32.vlgmr.msrb.gmra.mxu3 %vm242_vm2, %v1907_v29 }
 0x2f4   :  { %v794_v38 = vpop.permute.xlu0 %793  ;;  %v786_v4 = vpop.permute.xlu1 %785 }
 0x2f5   :  { %v804_v48 = vmul.f32 %v794_v38, %v694_v34  ;;  %v800_v7 = vmul.f32 %v786_v4, %v690_v44 }
 0x2f6   :  { %1687 = vmatmul.msk.f32.gmra.mxu3 %vm242_vm2, %v1908_v37 }
 0x2f7   :  { %823 = vmatpush.msrb.mxu1 %v804_v48 }
 0x2f9   :  { %824 = vmatpush.msrb.mxu1 %v803_v63  ;;  %v1909_v63 = vld [vmem:[%s2706_s7 + $0x10] sm:$0xff] }
 0x2fb   :  { %825 = vmatpush.msrb.mxu1 %v802_v39 }
 0x2fc   :  { %v788_v5 = vpop.permute.xlu0 %787 }
 0x2fd   :  { %v801_v6 = vmul.f32 %v788_v5, %v691_v1  ;;  %v1910_v5 = vld [vmem:[%s2706_s7 + $0x18] sm:$0xff] }
 0x2fe   :  { %1688 = vmatmul.msk.f32.gmra.mxu3 %vm242_vm2, %v1909_v63 }
 0x2ff   :  { %826 = vmatpush.msrb.mxu1 %v801_v6 }
 0x301   :  { %827 = vmatpush.msrb.mxu1 %v800_v7  ;;  %v1911_v7 = vld [vmem:[%s2706_s7 + $0x20] sm:$0xff] }
 0x302   :  { %1680 = vmatmul.msk.f32.vlgmr.msrb.gmra.mxu1 %vm805_vm13, %v2364_v46 }
 0x306   :  { %1689 = vmatmul.msk.f32.gmra.mxu3 %vm242_vm2, %v1910_v5 }
 0x30a   :  { %1681 = vmatmul.msk.f32.gmra.mxu1 %vm805_vm13, %v2369_v23 }
 0x30e   :  { %1690 = vmatmul.msk.f32.gmra.mxu3 %vm242_vm2, %v1911_v7 }
 0x371   :  { %v911_v52 = vpop.f32.mrf.mxu3 }
 0x372   :  { %v2434_v12 = vadd.f32 %v2431_v11, %v911_v52 }
 0x37f   :  { %v829_v14 = vpop.f32.mrf.mxu1 }
 0x380   :  { %v839_v15 = vmul.f32 %v1746_v8, %v829_v14 }
 0x382   :  { %v845_v16 = vadd.f32 %v1747_v13, %v839_v15  ;;  %v914_v15 = vpop.f32.mrf.mxu3 }
 0x384   :  { %v847_v17 = vadd.f32 %v845_v16, %v2080_v40  ;;  %v2441_v16 = vadd.f32 %v2431_v11, %v914_v15 }
 0x386   :  { %v849_v18 = vand.u32 2147483647, %v847_v17  ;;  %v875_v47 = vmax.f32 %v847_v17, 0.0  ;;  %vm879_vm15 = vcmp.gt.f32.partialorder %v847_v17, 20.0 }
 0x387   :  { %v832_v20 = vpop.f32.mrf.mxu1 }
 0x388   :  { %v851_v21 = vsub.f32 0.0, %v849_v18  ;;  %v840_v22 = vmul.f32 %v1746_v8, %v832_v20  ;;  %v926_v8 = vsub.f32 0.0, %v2434_v12 }
 0x38a   :  { %v853_v24 = vmul.f32 1.442695, %v851_v21  ;;  %v846_v25 = vadd.f32 %v1747_v13, %v840_v22  ;;  %v931_v14 = vmul.f32 1.442695, %v926_v8  ;;  %v917_v22 = vpop.f32.mrf.mxu3 }
 0x38c   :  { %1823 = vpow2.f32 %v853_v24  ;;  %v848_v28 = vadd.f32 %v846_v25, %v2089_v50  ;;  %v2447_v24 = vadd.f32 %v2431_v11, %v917_v22 }
 0x38e   :  { %v850_v40 = vand.u32 2147483647, %v848_v28  ;;  %v876_v1 = vmax.f32 %v848_v28, 0.0  ;;  %vm880_vm4 = vcmp.gt.f32.partialorder %v848_v28, 20.0 }
 0x390   :  { %v852_v30 = vsub.f32 0.0, %v850_v40 }
 0x392   :  { %v1824_v31 = vpop.eup %1823  ;;  %v855_v34 = vmul.f32 1.442695, %v852_v30  ;;  %v920_v29 = vpop.f32.mrf.mxu3 }
 0x393   :  { %v857_v35 = vadd.f32 1.0, %v1824_v31  ;;  %v860_v36 = vmul.f32 -0.5, %v1824_v31  ;;  %v863_v38 = vand.u32 2147483647, %v1824_v31 }
 0x394   :  { %1825 = vpow2.f32 %v855_v34  ;;  %v1709_v34 = vld [vmem:[%s2677_s11 + $0x30] sm:$0xff] }
 0x395   :  { %1827 = vlog2.f32 %v857_v35  ;;  %v861_v50 = vadd.f32 1.0, %v860_v36  ;;  %vm864_vm1 = vcmp.lt.f32.partialorder %v863_v38, 0.0004427343 }
 0x397   :  { %v862_v55 = vmul.f32 %v1824_v31, %v861_v50  ;;  %v1710_v31 = vld [vmem:[%s2677_s11 + $0x38] sm:$0xff] }
 0x398   :  { %1164 = vmatpush.msrb.mxu0 %v1710_v31 }
 0x39a   :  { %v1826_v42 = vpop.eup %1825  ;;  %1165 = vmatpush.msrb.mxu0 %v1709_v34 }
 0x39b   :  { %v1828_v43 = vpop.eup %1827  ;;  %v866_v48 = vadd.f32 1.0, %v1826_v42  ;;  %v869_v59 = vmul.f32 -0.5, %v1826_v42  ;;  %v872_v10 = vand.u32 2147483647, %v1826_v42 }
 0x39c   :  { %v859_v51 = vmul.f32 0.6931472, %v1828_v43 }
 0x39d   :  { %1829 = vlog2.f32 %v866_v48  ;;  %v870_v0 = vadd.f32 1.0, %v869_v59  ;;  %vm873_vm3 = vcmp.lt.f32.partialorder %v872_v10, 0.0004427343 }
 0x39e   :  { %v865_v32 = vsel %vm864_vm1, %v862_v55, %v859_v51  ;;  %1831 = vpow2.f32 %v931_v14 }
 0x39f   :  { %v877_v45 = vadd.f32 %v875_v47, %v865_v32  ;;  %v871_v3 = vmul.f32 %v1826_v42, %v870_v0 }
 0x3a1   :  { %v2412_v2 = vsel %vm879_vm15, %v847_v17, %v877_v45  ;;  %v927_v17 = vsub.f32 0.0, %v2441_v16  ;;  %v923_v45 = vpop.f32.mrf.mxu3 }
 0x3a2   :  { %1695 = vmatmul.msk.f32.vlgmr.msra.gmra.mxu0 %vm398_vm7, %v2412_v2 }
 0x3a3   :  { %v1830_v33 = vpop.eup %1829  ;;  %v933_v18 = vmul.f32 1.442695, %v927_v17 }
 0x3a4   :  { %v868_v39 = vmul.f32 0.6931472, %v1830_v33  ;;  %v1832_v20 = vpop.eup %1831  ;;  %v2471_v33 = vadd.f32 %v2431_v11, %v923_v45 }
 0x3a5   :  { %v941_v21 = vadd.f32 1.0, %v1832_v20  ;;  %1833 = vpow2.f32 %v933_v18 }
 0x3a6   :  { %v874_v4 = vsel %vm873_vm3, %v871_v3, %v868_v39  ;;  %v1708_v39 = vld [vmem:[%s2677_s11 + $0x28] sm:$0xff] }
 0x3a7   :  { %v878_v44 = vadd.f32 %v876_v1, %v874_v4  ;;  %1835 = vrcp.f32 %v941_v21  ;;  %v957_v30 = vand.u32 2147483648, %v941_v21  ;;  %vm951_vm2 = vweird.f32 %v941_v21  ;;  %1166 = vmatpush.msrb.mxu0 %v1708_v39 }
 0x3a8   :  { %v930_v4 = vsub.f32 0.0, %v2471_v33 }
 0x3a9   :  { %v2420_v6 = vsel %vm880_vm4, %v848_v28, %v878_v44  ;;  %v958_v38 = vor.u32 1.1754944e-38, %v957_v30 }
 0x3aa   :  { %1696 = vmatmul.msk.f32.gmra.mxu0 %vm398_vm7, %v2420_v6 }
 0x3ab   :  { %v1834_v25 = vpop.eup %1833 }
 0x3ac   :  { %v942_v26 = vadd.f32 1.0, %v1834_v25 }
 0x3ad   :  { %v1836_v28 = vpop.eup %1835 }
 0x3ae   :  { %v947_v40 = vmul.f32 %v1836_v28, %v941_v21  ;;  %1837 = vrcp.f32 %v942_v26  ;;  %vm952_vm5 = vweird.f32 %v1836_v28  ;;  %vm966_vm9 = vweird.f32 %v942_v26 }
 0x3af   :  { %vm2462_vm6 = vmor %vm951_vm2, %vm952_vm5  ;;  %v970_v47 = vand.u32 2147483647, %v942_v26  ;;  %v972_v32 = vand.u32 2147483648, %v942_v26 }
 0x3b0   :  { %v948_v35 = vsub.f32 1.0, %v947_v40 }
 0x3b1   :  { %v973_v5 = vor.u32 1.1754944e-38, %v972_v32  ;;  %vm971_vm12 = vcmp.eq.f32.partialorder %v970_v47, 8.507059e+37 }
 0x3b2   :  { %v949_v37 = vmul.f32 %v1836_v28, %v948_v35 }
 0x3b4   :  { %v1838_v43 = vpop.eup %1837  ;;  %v950_v48 = vadd.f32 %v1836_v28, %v949_v37 }
 0x3b5   :  { %v962_v55 = vmul.f32 %v1838_v43, %v942_v26  ;;  %vm967_vm10 = vweird.f32 %v1838_v43 }
 0x3b6   :  { %v954_v59 = vsel %vm2462_vm6, %v1836_v28, %v950_v48  ;;  %vm968_vm11 = vmor %vm966_vm9, %vm967_vm10 }
 0x3b7   :  { %v963_v10 = vsub.f32 1.0, %v962_v55 }
 0x3b9   :  { %v964_v1 = vmul.f32 %v1838_v43, %v963_v10 }
 0x3bb   :  { %v965_v7 = vadd.f32 %v1838_v43, %v964_v1 }
 0x3bd   :  { %v969_v52 = vsel %vm968_vm11, %v1838_v43, %v965_v7 }
 0x41f   :  { %v1054_v9 = vpop.f32.mrf.mxu0 }
 0x427   :  { %v1057_v61 = vpop.f32.mrf.mxu0 }
 0x428   :  { %v1737_v13 = vpack.i.bf16 %v1054_v9, %v1057_v61  ;;  %1114 = vmatpush.msra.mxu2 %v1057_v61 }
 0x42a   :  { %1738 = vrot.lane.b32.xlu2 %v1737_v13, %s1913_s27  ;;  %1115 = vmatpush.msra.mxu2 %v1054_v9  ;;  %v939_v9 = vmul.f32 1.442695, %v930_v4 }
 0x42b   :  { %1702 = vmatmul.msk.f32.vlgmr.msra.gmra.mxu2 %vm161_vm0, %v2187_v62  ;;  %v928_v62 = vsub.f32 0.0, %v2447_v24 }
 0x42d   :  { %v935_v27 = vmul.f32 1.442695, %v928_v62 }
 0x42f   :  { %1839 = vpow2.f32 %v935_v27 }
 0x433   :  { %1703 = vmatmul.msk.f32.gmra.mxu2 %vm161_vm0, %v2203_v19  ;;  %v2453_v19 = vadd.f32 %v2431_v11, %v920_v29 }
 0x435   :  { %v929_v36 = vsub.f32 0.0, %v2453_v19  ;;  %v1840_v51 = vpop.eup %1839 }
 0x436   :  { %v943_v63 = vadd.f32 1.0, %v1840_v51 }
 0x437   :  { %v937_v42 = vmul.f32 1.442695, %v929_v36 }
 0x438   :  { %v987_v14 = vand.u32 2147483648, %v943_v63  ;;  %vm981_vm14 = vweird.f32 %v943_v63  ;;  %v985_v17 = vand.u32 2147483647, %v943_v63 }
 0x439   :  { %1841 = vpow2.f32 %v937_v42 }
 0x43a   :  { %1843 = vrcp.f32 %v943_v63  ;;  %v988_v22 = vor.u32 1.1754944e-38, %v987_v14  ;;  %vm986_vm3 = vcmp.eq.f32.partialorder %v985_v17, 8.507059e+37 }
 0x43b   :  { %1704 = vmatmul.msk.f32.gmra.mxu2 %vm161_vm0, %v2209_v41  ;;  %v955_v41 = vand.u32 2147483647, %v941_v21  ;;  %1845 = vpow2.f32 %v939_v9 }
 0x43d   :  { %vm956_vm8 = vcmp.eq.f32.partialorder %v955_v41, 8.507059e+37 }
 0x43e   :  { %v959_v0 = vsel %vm956_vm8, %v958_v38, %v954_v59 }
 0x43f   :  { %v1021_v3 = vmul.f32 %v959_v0, %v2434_v12  ;;  %v1842_v44 = vpop.eup %1841  ;;  %v974_v12 = vsel %vm971_vm12, %v973_v5, %v969_v52 }
 0x440   :  { %v944_v11 = vadd.f32 1.0, %v1842_v44  ;;  %v1844_v61 = vpop.eup %1843  ;;  %v1022_v8 = vmul.f32 %v974_v12, %v2441_v16 }
 0x441   :  { %v977_v13 = vmul.f32 %v1844_v61, %v943_v63  ;;  %vm982_vm1 = vweird.f32 %v1844_v61  ;;  %v1846_v18 = vpop.eup %1845 }
 0x442   :  { %1847 = vrcp.f32 %v944_v11  ;;  %vm983_vm15 = vmor %vm981_vm14, %vm982_vm1  ;;  %v945_v62 = vadd.f32 1.0, %v1846_v18  ;;  %vm996_vm4 = vweird.f32 %v944_v11  ;;  %v1002_v26 = vand.u32 2147483648, %v944_v11 }
 0x443   :  { %1705 = vmatmul.msk.f32.gmra.mxu2 %vm161_vm0, %v2225_v54  ;;  %v1707_v54 = vld [vmem:[%s2677_s11 + $0x20] sm:$0xff]  ;;  %v978_v15 = vsub.f32 1.0, %v977_v13  ;;  %v1000_v28 = vand.u32 2147483647, %v944_v11 }
 0x444   :  { %1167 = vmatpush.msrb.mxu0 %v1707_v54  ;;  %1849 = vrcp.f32 %v945_v62  ;;  %v1003_v31 = vor.u32 1.1754944e-38, %v1002_v26  ;;  %vm1011_vm8 = vweird.f32 %v945_v62  ;;  %v1017_v50 = vand.u32 2147483648, %v945_v62 }
 0x445   :  { %1711 = vmatmul.msk.f32.vlgmr.msrb.gmra.mxu0 %vm398_vm7, %v1021_v3  ;;  %v979_v20 = vmul.f32 %v1844_v61, %v978_v15  ;;  %vm1001_vm6 = vcmp.eq.f32.partialorder %v1000_v28, 8.507059e+37  ;;  %v1015_v43 = vand.u32 2147483647, %v945_v62 }
 0x447   :  { %v980_v25 = vadd.f32 %v1844_v61, %v979_v20  ;;  %vm1016_vm11 = vcmp.eq.f32.partialorder %v1015_v43, 8.507059e+37 }
 0x448   :  { %v1848_v21 = vpop.eup %1847 }
 0x449   :  { %v984_v16 = vsel %vm983_vm15, %v1844_v61, %v980_v25  ;;  %vm997_vm2 = vweird.f32 %v1848_v21 }
 0x44a   :  { %v989_v40 = vsel %vm986_vm3, %v988_v22, %v984_v16  ;;  %vm998_vm5 = vmor %vm996_vm4, %vm997_vm2  ;;  %v1850_v35 = vpop.eup %1849 }
 0x44b   :  { %1706 = vmatmul.msk.f32.gmra.mxu2 %vm161_vm0, %v2237_v57  ;;  %v992_v57 = vmul.f32 %v1848_v21, %v944_v11  ;;  %v1023_v29 = vmul.f32 %v989_v40, %v2447_v24  ;;  %v1007_v36 = vmul.f32 %v1850_v35, %v945_v62  ;;  %vm1012_vm9 = vweird.f32 %v1850_v35 }
 0x44c   :  { %vm1013_vm10 = vmor %vm1011_vm8, %vm1012_vm9  ;;  %v1018_v24 = vor.u32 1.1754944e-38, %v1017_v50 }
 0x44d   :  { %1712 = vmatmul.msk.f32.gmra.mxu0 %vm398_vm7, %v1022_v8  ;;  %v993_v27 = vsub.f32 1.0, %v992_v57  ;;  %v1008_v42 = vsub.f32 1.0, %v1007_v36 }
 0x44f   :  { %v994_v30 = vmul.f32 %v1848_v21, %v993_v27  ;;  %v1009_v48 = vmul.f32 %v1850_v35, %v1008_v42 }
 0x451   :  { %v995_v34 = vadd.f32 %v1848_v21, %v994_v30  ;;  %v1010_v51 = vadd.f32 %v1850_v35, %v1009_v48 }
 0x453   :  { %v999_v41 = vsel %vm998_vm5, %v1848_v21, %v995_v34  ;;  %v1014_v55 = vsel %vm1013_vm10, %v1850_v35, %v1010_v51 }
 0x454   :  { %v1004_v37 = vsel %vm1001_vm6, %v1003_v31, %v999_v41  ;;  %v1019_v59 = vsel %vm1016_vm11, %v1018_v24, %v1014_v55 }
 0x455   :  { %1713 = vmatmul.msk.f32.gmra.mxu0 %vm398_vm7, %v1023_v29  ;;  %v1024_v38 = vmul.f32 %v1004_v37, %v2453_v19  ;;  %v1025_v47 = vmul.f32 %v1019_v59, %v2471_v33 }
 0x45d   :  { %1714 = vmatmul.msk.f32.gmra.mxu0 %vm398_vm7, %v1024_v38 }
 0x465   :  { %1715 = vmatmul.msk.f32.gmra.mxu0 %vm398_vm7, %v1025_v47 }
 0x484   :  { %v1739_v32 = vpop.permute.xlu2 %1738 }
 0x485   :  { %v1740_v63 = vunpack.i.l.bf16 %v1739_v32  ;;  %v1741_v45 = vunpack.i.h.bf16 %v1739_v32 }
 0x487   :  { %1082 = vmatpush.msra.mxu1 %v1740_v63 }
 0x489   :  { %1083 = vmatpush.msra.mxu1 %v1741_v45 }
 0x48a   :  { %1697 = vmatmul.msk.f32.vlgmr.msra.gmra.mxu1 %vm161_vm0, %v2215_v49 }
 0x492   :  { %1698 = vmatmul.msk.f32.gmra.mxu1 %vm161_vm0, %v2222_v53  ;;  %v1749_v53 = vld [vmem:[%s2678_s12 + $0x1] ss:$0 sm:$0xff] }
 0x49a   :  { %1699 = vmatmul.msk.f32.gmra.mxu1 %vm161_vm0, %v2234_v56 }
 0x4a2   :  { %1700 = vmatmul.msk.f32.gmra.mxu1 %vm161_vm0, %v2245_v58 }
 0x4aa   :  { %1701 = vmatmul.msk.f32.gmra.mxu1 %vm161_vm0, %v2251_v60 }
 0x4ae   :  { %v1117_v19 = vpop.f32.mrf.mxu2 }
 0x4b6   :  { %v1120_v33 = vpop.f32.mrf.mxu2 }
 0x4be   :  { %v1123_v1 = vpop.f32.mrf.mxu2 }
 0x4c2   :  { %v1169_v0 = vpop.f32.mrf.mxu0 }
 0x4c6   :  { %v1126_v52 = vpop.f32.mrf.mxu2 }
 0x4ca   :  { %v1172_v39 = vpop.f32.mrf.mxu0 }
 0x4ce   :  { %v1129_v57 = vpop.f32.mrf.mxu2 }
 0x4d2   :  { %v1175_v56 = vpop.f32.mrf.mxu0 }
 0x4da   :  { %v1178_v8 = vpop.f32.mrf.mxu0 }
 0x4e2   :  { %v1181_v40 = vpop.f32.mrf.mxu0 }
 0x507   :  { %v1085_v10 = vpop.f32.mrf.mxu1 }
 0x508   :  { %v1118_v54 = vadd.f32 %v1117_v19, %v1085_v10 }
 0x50a   :  { %v1184_v49 = vadd.f32 %v1169_v0, %v1118_v54 }
 0x50c   :  { %v2506_v4 = vadd.f32 %v1749_v53, %v1184_v49 }
 0x50e   :  { %v1299_v60 = vand.u32 2147483647, %v2506_v4  ;;  %vm1374_vm5 = vcmp.gt.f32.partialorder %v2506_v4, 20.0 }
 0x50f   :  { %v1088_v3 = vpop.f32.mrf.mxu1 }
 0x510   :  { %v1121_v58 = vadd.f32 %v1120_v33, %v1088_v3  ;;  %v1304_v61 = vsub.f32 0.0, %v1299_v60 }
 0x512   :  { %v1185_v9 = vadd.f32 %v1172_v39, %v1121_v58  ;;  %v1309_v18 = vmul.f32 1.442695, %v1304_v61 }
 0x514   :  { %v2512_v13 = vadd.f32 %v1749_v53, %v1185_v9 }
 0x516   :  { %v1300_v22 = vand.u32 2147483647, %v2512_v13  ;;  %vm1375_vm8 = vcmp.gt.f32.partialorder %v2512_v13, 20.0 }
 0x517   :  { %v1091_v5 = vpop.f32.mrf.mxu1 }
 0x518   :  { %v1124_v44 = vadd.f32 %v1123_v1, %v1091_v5  ;;  %v1305_v26 = vsub.f32 0.0, %v1300_v22 }
 0x51a   :  { %v1186_v7 = vadd.f32 %v1175_v56, %v1124_v44  ;;  %v1311_v34 = vmul.f32 1.442695, %v1305_v26 }
 0x51c   :  { %v2509_v11 = vadd.f32 %v1749_v53, %v1186_v7 }
 0x51e   :  { %v1301_v12 = vand.u32 2147483647, %v2509_v11  ;;  %v1366_v19 = vmax.f32 %v2509_v11, 0.0  ;;  %vm1376_vm14 = vcmp.gt.f32.partialorder %v2509_v11, 20.0 }
 0x51f   :  { %v1094_v14 = vpop.f32.mrf.mxu1 }
 0x520   :  { %v1306_v15 = vsub.f32 0.0, %v1301_v12  ;;  %v1127_v17 = vadd.f32 %v1126_v52, %v1094_v14 }
 0x522   :  { %v1313_v20 = vmul.f32 1.442695, %v1306_v15  ;;  %v1187_v21 = vadd.f32 %v1178_v8, %v1127_v17 }
 0x524   :  { %1851 = vpow2.f32 %v1313_v20  ;;  %v2515_v62 = vadd.f32 %v1749_v53, %v1187_v21 }
 0x525   :  { %1853 = vpow2.f32 %v1309_v18 }
 0x526   :  { %v1302_v25 = vand.u32 2147483647, %v2515_v62  ;;  %v1367_v9 = vmax.f32 %v2515_v62, 0.0  ;;  %vm1377_vm15 = vcmp.gt.f32.partialorder %v2515_v62, 20.0 }
 0x527   :  { %v1097_v16 = vpop.f32.mrf.mxu1 }
 0x528   :  { %v1307_v27 = vsub.f32 0.0, %v1302_v25  ;;  %v1130_v28 = vadd.f32 %v1129_v57, %v1097_v16  ;;  %v1364_v57 = vmax.f32 %v2506_v4, 0.0 }
 0x52a   :  { %v1852_v29 = vpop.eup %1851  ;;  %v1315_v30 = vmul.f32 1.442695, %v1307_v27  ;;  %v1188_v31 = vadd.f32 %v1181_v40, %v1130_v28 }
 0x52b   :  { %v1337_v35 = vadd.f32 1.0, %v1852_v29  ;;  %v1854_v41 = vpop.eup %1853  ;;  %v1340_v37 = vmul.f32 -0.5, %v1852_v29  ;;  %v1343_v48 = vand.u32 2147483647, %v1852_v29 }
 0x52c   :  { %1855 = vpow2.f32 %v1315_v30  ;;  %v2518_v36 = vadd.f32 %v1749_v53, %v1188_v31  ;;  %v1319_v38 = vadd.f32 1.0, %v1854_v41  ;;  %v1322_v33 = vmul.f32 -0.5, %v1854_v41 }
 0x52d   :  { %1857 = vlog2.f32 %v1337_v35  ;;  %v1341_v43 = vadd.f32 1.0, %v1340_v37  ;;  %vm1344_vm12 = vcmp.lt.f32.partialorder %v1343_v48, 0.0004427343  ;;  %v1325_v52 = vand.u32 2147483647, %v1854_v41 }
 0x52e   :  { %v1303_v50 = vand.u32 2147483647, %v2518_v36  ;;  %1859 = vpow2.f32 %v1311_v34  ;;  %v1323_v5 = vadd.f32 1.0, %v1322_v33  ;;  %v1368_v28 = vmax.f32 %v2518_v36, 0.0 }
 0x52f   :  { %1861 = vlog2.f32 %v1319_v38  ;;  %v1342_v32 = vmul.f32 %v1852_v29, %v1341_v43  ;;  %vm1326_vm3 = vcmp.lt.f32.partialorder %v1325_v52, 0.0004427343  ;;  %vm1378_vm2 = vcmp.gt.f32.partialorder %v2518_v36, 20.0 }
 0x530   :  { %v1308_v42 = vsub.f32 0.0, %v1303_v50  ;;  %v1324_v15 = vmul.f32 %v1854_v41, %v1323_v5  ;;  %v1365_v38 = vmax.f32 %v2512_v13, 0.0  ;;  %v1203_v48 = vsub.f32 0.0, %v2518_v36 }
 0x532   :  { %v1856_v24 = vpop.eup %1855  ;;  %v1317_v51 = vmul.f32 1.442695, %v1308_v42 }
 0x533   :  { %v1858_v55 = vpop.eup %1857  ;;  %v1346_v59 = vadd.f32 1.0, %v1856_v24  ;;  %v1349_v63 = vmul.f32 -0.5, %v1856_v24  ;;  %v1352_v53 = vand.u32 2147483647, %v1856_v24 }
 0x534   :  { %1863 = vpow2.f32 %v1317_v51  ;;  %v1339_v47 = vmul.f32 0.6931472, %v1858_v55  ;;  %v1860_v45 = vpop.eup %1859  ;;  %v1201_v51 = vsub.f32 0.0, %v2509_v11  ;;  %v1212_v55 = vmul.f32 1.442695, %v1203_v48 }
 0x535   :  { %1865 = vlog2.f32 %v1346_v59  ;;  %v1350_v39 = vadd.f32 1.0, %v1349_v63  ;;  %v1328_v54 = vadd.f32 1.0, %v1860_v45  ;;  %v1862_v3 = vpop.eup %1861  ;;  %vm1353_vm1 = vcmp.lt.f32.partialorder %v1352_v53, 0.0004427343 }
 0x536   :  { %v1345_v0 = vsel %vm1344_vm12, %v1342_v32, %v1339_v47  ;;  %v1321_v12 = vmul.f32 0.6931472, %v1862_v3  ;;  %v1331_v17 = vmul.f32 -0.5, %v1860_v45  ;;  %v1334_v29 = vand.u32 2147483647, %v1860_v45 }
 0x537   :  { %v1371_v10 = vadd.f32 %v1366_v19, %v1345_v0  ;;  %v1351_v60 = vmul.f32 %v1856_v24, %v1350_v39  ;;  %1867 = vlog2.f32 %v1328_v54  ;;  %v1202_v24 = vsub.f32 0.0, %v2515_v62 }
 0x538   :  { %v1327_v22 = vsel %vm1326_vm3, %v1324_v15, %v1321_v12  ;;  %v1332_v27 = vadd.f32 1.0, %v1331_v17  ;;  %vm1335_vm6 = vcmp.lt.f32.partialorder %v1334_v29, 0.0004427343  ;;  %v1200_v47 = vsub.f32 0.0, %v2512_v13 }
 0x539   :  { %v1381_v49 = vsel %vm1376_vm14, %v2509_v11, %v1371_v10  ;;  %v1369_v40 = vadd.f32 %v1364_v57, %v1327_v22  ;;  %v1210_v59 = vmul.f32 1.442695, %v1202_v24  ;;  %v1208_v32 = vmul.f32 1.442695, %v1201_v51 }
 0x53a   :  { %v1864_v1 = vpop.eup %1863  ;;  %1393 = vrot.lane.b32.xlu2 %v1381_v49, %s1915_s28  ;;  %v1333_v35 = vmul.f32 %v1860_v45, %v1332_v27  ;;  %v1199_v63 = vsub.f32 0.0, %v2506_v4  ;;  %v1206_v45 = vmul.f32 1.442695, %v1200_v47 }
 0x53b   :  { %v1866_v56 = vpop.eup %1865  ;;  %v1355_v58 = vadd.f32 1.0, %v1864_v1  ;;  %v1358_v7 = vmul.f32 -0.5, %v1864_v1  ;;  %v1361_v20 = vand.u32 2147483647, %v1864_v1  ;;  %v1379_v37 = vsel %vm1374_vm5, %v2506_v4, %v1369_v40 }
 0x53c   :  { %v1348_v44 = vmul.f32 0.6931472, %v1866_v56  ;;  %v1204_v19 = vmul.f32 1.442695, %v1199_v63 }
 0x53d   :  { %1869 = vlog2.f32 %v1355_v58  ;;  %v1359_v14 = vadd.f32 1.0, %v1358_v7  ;;  %v1868_v21 = vpop.eup %1867  ;;  %vm1362_vm4 = vcmp.lt.f32.partialorder %v1361_v20, 0.0004427343 }
 0x53e   :  { %v1354_v61 = vsel %vm1353_vm1, %v1351_v60, %v1348_v44  ;;  %v1330_v31 = vmul.f32 0.6931472, %v1868_v21  ;;  %1871 = vpow2.f32 %v1212_v55 }
 0x53f   :  { %v1372_v8 = vadd.f32 %v1367_v9, %v1354_v61  ;;  %v1360_v16 = vmul.f32 %v1864_v1, %v1359_v14  ;;  %1873 = vpow2.f32 %v1210_v59 }
 0x540   :  { %v1336_v50 = vsel %vm1335_vm6, %v1333_v35, %v1330_v31  ;;  %1875 = vpow2.f32 %v1208_v32 }
 0x541   :  { %v1382_v18 = vsel %vm1377_vm15, %v2515_v62, %v1372_v8  ;;  %v1370_v42 = vadd.f32 %v1365_v38, %v1336_v50  ;;  %1877 = vpow2.f32 %v1206_v45 }
 0x542   :  { %1395 = vrot.lane.b32.xlu1 %v1382_v18, %s1915_s28  ;;  %1879 = vpow2.f32 %v1204_v19 }
 0x543   :  { %v1870_v25 = vpop.eup %1869  ;;  %v1380_v43 = vsel %vm1375_vm8, %v2512_v13, %v1370_v42 }
 0x544   :  { %v1357_v26 = vmul.f32 0.6931472, %v1870_v25  ;;  %v1872_v0 = vpop.eup %1871 }
 0x545   :  { %v1874_v10 = vpop.eup %1873  ;;  %v1218_v33 = vadd.f32 1.0, %v1872_v0 }
 0x546   :  { %v1363_v30 = vsel %vm1362_vm4, %v1360_v16, %v1357_v26  ;;  %v1876_v39 = vpop.eup %1875  ;;  %v1217_v54 = vadd.f32 1.0, %v1874_v10 }
 0x547   :  { %v1373_v34 = vadd.f32 %v1368_v28, %v1363_v30  ;;  %v1878_v3 = vpop.eup %1877  ;;  %v2546_v49 = vadd.f32 1.0, %v1876_v39  ;;  %1881 = vrcp.f32 %v1218_v33  ;;  %v1290_v57 = vand.u32 2147483648, %v1218_v33 }
 0x548   :  { %v1880_v53 = vpop.eup %1879  ;;  %1883 = vrcp.f32 %v1217_v54  ;;  %v2548_v1 = vadd.f32 1.0, %v1878_v3  ;;  %vm1284_vm11 = vweird.f32 %v1218_v33  ;;  %v1288_v27 = vand.u32 2147483647, %v1218_v33 }
 0x549   :  { %v1383_v41 = vsel %vm1378_vm2, %v2518_v36, %v1373_v34  ;;  %1885 = vrcp.f32 %v2546_v49  ;;  %v2551_v56 = vadd.f32 1.0, %v1880_v53  ;;  %v1275_v28 = vand.u32 2147483648, %v1217_v54 }
 0x54a   :  { %1397 = vrot.lane.b32.xlu0 %v1383_v41, %s1915_s28  ;;  %1389 = vrot.lane.b32.xlu1 %v1379_v37, %s1915_s28  ;;  %1887 = vrcp.f32 %v2548_v1  ;;  %vm1269_vm1 = vweird.f32 %v1217_v54  ;;  %v1273_v31 = vand.u32 2147483647, %v1217_v54  ;;  %v1260_v35 = vand.u32 2147483648, %v2546_v49 }
 0x54b   :  { %1889 = vrcp.f32 %v2551_v56  ;;  %v1291_v37 = vor.u32 1.1754944e-38, %v1290_v57  ;;  %vm1254_vm3 = vweird.f32 %v2546_v49  ;;  %v1258_v38 = vand.u32 2147483647, %v2546_v49 }
 0x54c   :  { %vm1289_vm4 = vcmp.eq.f32.partialorder %v1288_v27, 8.507059e+37  ;;  %v1276_v48 = vor.u32 1.1754944e-38, %v1275_v28  ;;  %vm1274_vm6 = vcmp.eq.f32.partialorder %v1273_v31, 8.507059e+37  ;;  %v1261_v59 = vor.u32 1.1754944e-38, %v1260_v35 }
 0x54d   :  { %v1882_v58 = vpop.eup %1881  ;;  %v1245_v63 = vand.u32 2147483648, %v2548_v1  ;;  %v1243_v0 = vand.u32 2147483647, %v2548_v1  ;;  %v1230_v39 = vand.u32 2147483648, %v2551_v56 }
 0x54e   :  { %v1884_v5 = vpop.eup %1883  ;;  %v1280_v44 = vmul.f32 %v1882_v58, %v1218_v33  ;;  %vm1285_vm9 = vweird.f32 %v1882_v58 }
 0x54f   :  { %v1886_v60 = vpop.eup %1885  ;;  %v1265_v7 = vmul.f32 %v1884_v5, %v1217_v54  ;;  %vm1270_vm10 = vweird.f32 %v1884_v5  ;;  %vm2564_vm14 = vmor %vm1284_vm11, %vm1285_vm9  ;;  %vm1239_vm9 = vweird.f32 %v2548_v1  ;;  %vm1224_vm11 = vweird.f32 %v2551_v56 }
 0x550   :  { %v2555_v9 = vpop.eup %1887  ;;  %v1250_v52 = vmul.f32 %v1886_v60, %v2546_v49  ;;  %v1281_v61 = vsub.f32 1.0, %v1280_v44  ;;  %vm1255_vm12 = vweird.f32 %v1886_v60  ;;  %vm2572_vm15 = vmor %vm1269_vm1, %vm1270_vm10  ;;  %vm1259_vm10 = vcmp.eq.f32.partialorder %v1258_v38, 8.507059e+37 }
 0x551   :  { %v2558_v12 = vpop.eup %1889  ;;  %v1266_v8 = vsub.f32 1.0, %v1265_v7  ;;  %v1235_v14 = vmul.f32 %v2555_v9, %v2548_v1  ;;  %vm2582_vm2 = vmor %vm1254_vm3, %vm1255_vm12  ;;  %vm1240_vm8 = vweird.f32 %v2555_v9  ;;  %v1228_v49 = vand.u32 2147483647, %v2551_v56 }
 0x552   :  { %1391 = vrot.lane.b32.xlu0 %v1380_v43, %s1915_s28  ;;  %v1251_v15 = vsub.f32 1.0, %v1250_v52  ;;  %v1282_v17 = vmul.f32 %v1882_v58, %v1281_v61  ;;  %v1220_v18 = vmul.f32 %v2558_v12, %v2551_v56  ;;  %vm1225_vm5 = vweird.f32 %v2558_v12  ;;  %vm1241_vm12 = vmor %vm1239_vm9, %vm1240_vm8 }
 0x553   :  { %v1267_v20 = vmul.f32 %v1884_v5, %v1266_v8  ;;  %v1236_v21 = vsub.f32 1.0, %v1235_v14  ;;  %vm1244_vm1 = vcmp.eq.f32.partialorder %v1243_v0, 8.507059e+37 }
 0x554   :  { %v1252_v22 = vmul.f32 %v1886_v60, %v1251_v15  ;;  %v1283_v25 = vadd.f32 %v1882_v58, %v1282_v17  ;;  %v1221_v26 = vsub.f32 1.0, %v1220_v18 }
 0x555   :  { %v1268_v16 = vadd.f32 %v1884_v5, %v1267_v20  ;;  %v1237_v29 = vmul.f32 %v2555_v9, %v1236_v21 }
 0x556   :  { %v1253_v30 = vadd.f32 %v1886_v60, %v1252_v22  ;;  %v1287_v34 = vsel %vm2564_vm14, %v1882_v58, %v1283_v25  ;;  %v1222_v50 = vmul.f32 %v2558_v12, %v1221_v26  ;;  %vm1226_vm14 = vmor %vm1224_vm11, %vm1225_vm5  ;;  %v1509_v26 = vld [vmem:[%s2682_s15 + $0x18] sm:$0xff] }
 0x557   :  { %v1272_v42 = vsel %vm2572_vm15, %v1884_v5, %v1268_v16  ;;  %v1292_v24 = vsel %vm1289_vm4, %v1291_v37, %v1287_v34  ;;  %v1238_v55 = vadd.f32 %v2555_v9, %v1237_v29  ;;  %vm1229_vm15 = vcmp.eq.f32.partialorder %v1228_v49, 8.507059e+37  ;;  %v1508_v16 = vld [vmem:[%s2682_s15 + $0x10] sm:$0xff] }
 0x558   :  { %v1257_v51 = vsel %vm2582_vm2, %v1886_v60, %v1253_v30  ;;  %v1277_v32 = vsel %vm1274_vm6, %v1276_v48, %v1272_v42  ;;  %v1298_v45 = vmul.f32 %v1292_v24, %v2518_v36  ;;  %v1223_v19 = vadd.f32 %v2558_v12, %v1222_v50 }
 0x559   :  { %v1262_v10 = vsel %vm1259_vm10, %v1261_v59, %v1257_v51  ;;  %v1297_v54 = vmul.f32 %v1277_v32, %v2515_v62  ;;  %v1242_v53 = vsel %vm1241_vm12, %v2555_v9, %v1238_v55  ;;  %v1246_v36 = vor.u32 1.1754944e-38, %v1245_v63 }
 0x55a   :  { %v1296_v1 = vmul.f32 %v1262_v10, %v2509_v11  ;;  %v1227_v44 = vsel %vm1226_vm14, %v2558_v12, %v1223_v19  ;;  %v1231_v60 = vor.u32 1.1754944e-38, %v1230_v39  ;;  %v1750_v12 = vld [vmem:[%s2680_s13 + $0x1] ss:$0 sm:$0xff]  ;;  %vm1637_vm14 = vcmask 1024  }
 0x55b   :  { %v1247_v7 = vsel %vm1244_vm1, %v1246_v36, %v1242_v53  ;;  %v1482_v10 = vld [vmem:[%s2683_s5] sm:$0x3]  ;;  %v1559_v36 = vld [vmem:[%s2686_s17 + $0x10] sm:$0xff] }
 0x55c   :  { %v1232_v56 = vsel %vm1229_vm15, %v1231_v60, %v1227_v44  ;;  %v1295_v9 = vmul.f32 %v1247_v7, %v2512_v13  ;;  %v1751_v13 = vld [vmem:[%s2681_s14 + $0x1] ss:$0 sm:$0xff] }
 0x55d   :  { %v1294_v8 = vmul.f32 %v1232_v56, %v2506_v4  ;;  %v1506_v39 = vld [vmem:[%s2682_s15] sm:$0xff] }
 0x55e   :  { %v1557_v60 = vld [vmem:[%s2686_s17] sm:$0xff] }
 0x594   :  { %v1394_v58 = vpop.permute.xlu2 %1393 }
 0x595   :  { %v1406_v62 = vmul.f32 %v1394_v58, %v1296_v1  ;;  %v1560_v58 = vld [vmem:[%s2686_s17 + $0x18] sm:$0xff] }
 0x596   :  { %1580 = vmatpush.msrb.mxu2 %v1560_v58 }
 0x598   :  { %1581 = vmatpush.msrb.mxu2 %v1559_v36 }
 0x5b4   :  { %v1396_v47 = vpop.permute.xlu1 %1395 }
 0x5b5   :  { %v1407_v5 = vmul.f32 %v1396_v47, %v1297_v54 }
 0x5bc   :  { %v1398_v33 = vpop.permute.xlu0 %1397  ;;  %v1390_v52 = vpop.permute.xlu1 %1389 }
 0x5bd   :  { %v1408_v3 = vmul.f32 %v1398_v33, %v1298_v45  ;;  %v1404_v11 = vmul.f32 %v1390_v52, %v1294_v8 }
 0x5bf   :  { %1420 = vmatpush.msra.mxu3 %v1408_v3  ;;  %v1752_v3 = vld [vmem:[%s2684_s16] ss:$0 sm:$0xff] }
 0x5c1   :  { %1421 = vmatpush.msra.mxu3 %v1407_v5  ;;  %v1558_v5 = vld [vmem:[%s2686_s17 + $0x8] sm:$0xff] }
 0x5c2   :  { %1582 = vmatpush.msrb.mxu2 %v1558_v5 }
 0x5c3   :  { %1422 = vmatpush.msra.mxu3 %v1406_v62 }
 0x5c4   :  { %v1392_v61 = vpop.permute.xlu0 %1391  ;;  %1583 = vmatpush.msrb.mxu2 %v1557_v60 }
 0x5c5   :  { %v1405_v14 = vmul.f32 %v1392_v61, %v1295_v9 }
 0x5c7   :  { %1423 = vmatpush.msra.mxu3 %v1405_v14 }
 0x5c9   :  { %1424 = vmatpush.msra.mxu3 %v1404_v11 }
 0x5ca   :  { %1717 = vmatmul.msk.f32.vlgmr.msra.gmra.mxu3 %vm805_vm13, %v2364_v46 }
 0x5cb   :  { %1529 = vmatpush.msrb.mxu3 %v1509_v26 }
 0x5cd   :  { %1530 = vmatpush.msrb.mxu3 %v1508_v16 }
 0x5d2   :  { %1718 = vmatmul.msk.f32.gmra.mxu3 %vm805_vm13, %v2369_v23 }
 0x64d   :  { %v1426_v15 = vpop.f32.mrf.mxu3 }
 0x64e   :  { %v1437_v4 = vmul.f32 %v1750_v12, %v1426_v15 }
 0x650   :  { %v1444_v17 = vadd.f32 %v1751_v13, %v1437_v4 }
 0x652   :  { %v1446_v18 = vadd.f32 %v1444_v17, %v2412_v2  ;;  %v1507_v2 = vld [vmem:[%s2682_s15 + $0x8] sm:$0xff]  ;;  %v1753_v17 = vld [vmem:[%s2685_s18] ss:$0 sm:$0xff] }
 0x653   :  { %1531 = vmatpush.msrb.mxu3 %v1507_v2 }
 0x654   :  { %v1448_v20 = vand.u32 2147483647, %v1446_v18  ;;  %v1474_v32 = vmax.f32 %v1446_v18, 0.0  ;;  %vm1478_vm2 = vcmp.gt.f32.partialorder %v1446_v18, 20.0 }
 0x655   :  { %v1429_v21 = vpop.f32.mrf.mxu3  ;;  %1532 = vmatpush.msrb.mxu3 %v1506_v39 }
 0x656   :  { %v1450_v22 = vsub.f32 0.0, %v1448_v20  ;;  %v1438_v46 = vmul.f32 %v1750_v12, %v1429_v21  ;;  %v1609_v21 = vld [vmem:[%s2687_s19 + $0x8] sm:$0xff] }
 0x658   :  { %v1452_v25 = vmul.f32 1.442695, %v1450_v22  ;;  %v1445_v57 = vadd.f32 %v1751_v13, %v1438_v46  ;;  %v1608_v22 = vld [vmem:[%s2687_s19] sm:$0xff] }
 0x65a   :  { %1891 = vpow2.f32 %v1452_v25  ;;  %v1447_v23 = vadd.f32 %v1445_v57, %v2420_v6  ;;  %v26_v25 = vstv %s2688_s20 }
 0x65b   :  { %27 = vst [vmem:[#allocation2] sm:$0x1] %v26_v25 }
 0x65c   :  { %v1449_v27 = vand.u32 2147483647, %v1447_v23  ;;  %v1475_v47 = vmax.f32 %v1447_v23, 0.0  ;;  %vm1479_vm4 = vcmp.gt.f32.partialorder %v1447_v23, 20.0 }
 0x65e   :  { %v1451_v28 = vsub.f32 0.0, %v1449_v27 }
 0x660   :  { %v1892_v40 = vpop.eup %1891  ;;  %v1454_v29 = vmul.f32 1.442695, %v1451_v28 }
 0x661   :  { %v1456_v6 = vadd.f32 1.0, %v1892_v40  ;;  %v1459_v31 = vmul.f32 -0.5, %v1892_v40  ;;  %v1462_v50 = vand.u32 2147483647, %v1892_v40 }
 0x662   :  { %1893 = vpow2.f32 %v1454_v29 }
 0x663   :  { %1895 = vlog2.f32 %v1456_v6  ;;  %v1460_v37 = vadd.f32 1.0, %v1459_v31  ;;  %vm1463_vm13 = vcmp.lt.f32.partialorder %v1462_v50, 0.0004427343 }
 0x665   :  { %v1461_v48 = vmul.f32 %v1892_v40, %v1460_v37 }
 0x668   :  { %v1894_v30 = vpop.eup %1893 }
 0x669   :  { %v1465_v34 = vadd.f32 1.0, %v1894_v30  ;;  %v1468_v35 = vmul.f32 -0.5, %v1894_v30  ;;  %v1896_v41 = vpop.eup %1895  ;;  %v1471_v43 = vand.u32 2147483647, %v1894_v30 }
 0x66a   :  { %v1458_v42 = vmul.f32 0.6931472, %v1896_v41  ;;  %v1754_v41 = vld [vmem:[#allocation2] ss:$0 sm:$0xff] }
 0x66b   :  { %1897 = vlog2.f32 %v1465_v34  ;;  %v1469_v38 = vadd.f32 1.0, %v1468_v35  ;;  %vm1472_vm3 = vcmp.lt.f32.partialorder %v1471_v43, 0.0004427343 }
 0x66c   :  { %v1464_v59 = vsel %vm1463_vm13, %v1461_v48, %v1458_v42 }
 0x66d   :  { %v1470_v55 = vmul.f32 %v1894_v30, %v1469_v38  ;;  %v1476_v19 = vadd.f32 %v1474_v32, %v1464_v59 }
 0x66f   :  { %v1480_v33 = vsel %vm1478_vm2, %v1446_v18, %v1476_v19 }
 0x671   :  { %v1898_v24 = vpop.eup %1897 }
 0x672   :  { %v1467_v51 = vmul.f32 0.6931472, %v1898_v24 }
 0x674   :  { %v1473_v63 = vsel %vm1472_vm3, %v1470_v55, %v1467_v51 }
 0x675   :  { %v1477_v45 = vadd.f32 %v1475_v47, %v1473_v63 }
 0x677   :  { %v1481_v0 = vsel %vm1479_vm4, %v1447_v23, %v1477_v45 }
 0x678   :  { %1500 = vmatpush.msrb.mxu1 %v1481_v0 }
 0x67a   :  { %1501 = vmatpush.msrb.mxu1 %v1480_v33 }
 0x67b   :  { %1721 = vmatmul.msk.f32.vlgmr.msrb.gmra.mxu1 %vm161_vm0, %v1482_v10 }
 0x67c   :  { %1631 = vmatpush.msra.mxu1 %v1609_v21 }
 0x67e   :  { %1632 = vmatpush.msra.mxu1 %v1608_v22 }
 0x6f8   :  { %v1503_v54 = vpop.f32.mrf.mxu1 }
 0x6f9   :  { %1722 = vmatmul.msk.f32.vlgmr.msrb.gmra.mxu3 %vm398_vm7, %v1503_v54 }
 0x77c   :  { %v1534_v49 = vpop.f32.mrf.mxu3 }
 0x77d   :  { %v1535_v53 = vadd.f32 %v1752_v3, %v1534_v49 }
 0x77f   :  { %v1537_v1 = vsub.f32 0.0, %v1535_v53 }
 0x781   :  { %v1538_v44 = vmul.f32 1.442695, %v1537_v1 }
 0x783   :  { %1899 = vpow2.f32 %v1538_v44 }
 0x789   :  { %v1900_v7 = vpop.eup %1899 }
 0x78a   :  { %v1540_v62 = vadd.f32 1.0, %v1900_v7 }
 0x78c   :  { %1901 = vrcp.f32 %v1540_v62  ;;  %v1552_v61 = vand.u32 2147483648, %v1540_v62  ;;  %v1550_v14 = vand.u32 2147483647, %v1540_v62  ;;  %vm1546_vm6 = vweird.f32 %v1540_v62 }
 0x78e   :  { %v1553_v12 = vor.u32 1.1754944e-38, %v1552_v61  ;;  %vm1551_vm9 = vcmp.eq.f32.partialorder %v1550_v14, 8.507059e+37 }
 0x792   :  { %v1902_v56 = vpop.eup %1901 }
 0x793   :  { %v1542_v9 = vmul.f32 %v1902_v56, %v1540_v62  ;;  %vm1547_vm5 = vweird.f32 %v1902_v56 }
 0x794   :  { %vm1548_vm8 = vmor %vm1546_vm6, %vm1547_vm5 }
 0x795   :  { %v1543_v52 = vsub.f32 1.0, %v1542_v9 }
 0x797   :  { %v1544_v8 = vmul.f32 %v1902_v56, %v1543_v52 }
 0x799   :  { %v1545_v11 = vadd.f32 %v1902_v56, %v1544_v8 }
 0x79b   :  { %v1549_v13 = vsel %vm1548_vm8, %v1902_v56, %v1545_v11 }
 0x79c   :  { %v1554_v15 = vsel %vm1551_vm9, %v1553_v12, %v1549_v13 }
 0x79d   :  { %v1556_v4 = vmul.f32 %v1554_v15, %v1535_v53 }
 0x79f   :  { %1723 = vmatmul.msk.f32.vlgmr.msrb.gmra.mxu2 %vm398_vm7, %v1556_v4 }
 0x822   :  { %v1585_v18 = vpop.f32.mrf.mxu2 }
 0x823   :  { %v1586_v20 = vadd.f32 %v1753_v17, %v1585_v18 }
 0x825   :  { %v1588_v46 = vsub.f32 0.0, %v1586_v20 }
 0x827   :  { %v1589_v57 = vmul.f32 1.442695, %v1588_v46 }
 0x829   :  { %1903 = vpow2.f32 %v1589_v57 }
 0x82f   :  { %v1904_v23 = vpop.eup %1903 }
 0x830   :  { %v1591_v26 = vadd.f32 1.0, %v1904_v23 }
 0x832   :  { %1905 = vrcp.f32 %v1591_v26  ;;  %v1603_v28 = vand.u32 2147483648, %v1591_v26  ;;  %v1601_v29 = vand.u32 2147483647, %v1591_v26  ;;  %vm1597_vm10 = vweird.f32 %v1591_v26 }
 0x834   :  { %v1604_v30 = vor.u32 1.1754944e-38, %v1603_v28  ;;  %vm1602_vm12 = vcmp.eq.f32.partialorder %v1601_v29, 8.507059e+37 }
 0x838   :  { %v1906_v16 = vpop.eup %1905 }
 0x839   :  { %v1593_v27 = vmul.f32 %v1906_v16, %v1591_v26  ;;  %vm1598_vm7 = vweird.f32 %v1906_v16 }
 0x83a   :  { %vm1599_vm11 = vmor %vm1597_vm10, %vm1598_vm7 }
 0x83b   :  { %v1594_v2 = vsub.f32 1.0, %v1593_v27 }
 0x83d   :  { %v1595_v40 = vmul.f32 %v1906_v16, %v1594_v2 }
 0x83f   :  { %v1596_v6 = vadd.f32 %v1906_v16, %v1595_v40 }
 0x841   :  { %v1600_v31 = vsel %vm1599_vm11, %v1906_v16, %v1596_v6 }
 0x842   :  { %v1605_v34 = vsel %vm1602_vm12, %v1604_v30, %v1600_v31 }
 0x843   :  { %v1607_v35 = vmul.f32 %v1605_v34, %v1586_v20 }
 0x845   :  { %1724 = vmatmul.msk.f32.vlgmr.msra.gmra.mxu1 %vm161_vm0, %v1607_v35 }
 0x8c2   :  { %v1634_v37 = vpop.f32.mrf.mxu1 }
 0x8c3   :  { %v1635_v50 = vadd.f32 %v1754_v41, %v1634_v37 }
 0x8c5   :  { %1638 = vst.msk [vmem:[%s2689_s21] sm:$0x3] %vm1637_vm14, %v1635_v50 }

</bundles_post_ra>
